<compile_context>
chip_gen: v7x
topology: tpu7x:2x2x1
jax: 0.10.0
libtpu: 0.0.40
codegen_flags: <defaults>
</compile_context>

<pallas_src>
import jax
import jax.numpy as jnp
import numpy as np
from jax.experimental import pallas as pl
from jax.experimental.pallas import tpu as pltpu

# ----- small synthetic config (shapes implied by the module) -----
B, T, VOCAB, E, H, P = 2, 8, 32, 32, 32, 3   # batch, seq, vocab, embed, hidden, polarity
D = 2 * H                                    # bidirectional LSTM feature size
PPAD = 128                                   # lane-dense padding of the P=3 output


def _sigmoid(x):
    # cheaper than 1/(1+exp(-x)): one EUP tanh, no divide, on the serial path
    return 0.5 * (jnp.tanh(0.5 * x) + 1.0)


# ---------------------------------------------------------------------------
# Fused kernel: bidirectional dynamic LSTM + GraphConvolution + relu +
# aspect mask + attention pooling + fc, all in one program.
# ---------------------------------------------------------------------------
def gcn_fused_kernel(xcat_ref, smask_ref, posw_ref, amask_ref, adjn_ref, perm_ref,
                     wih_ref, whh_ref, bias_ref, wg_ref, bg_ref, wf_ref, bf_ref,
                     out_ref, tout_ref):
    f32, bf16 = jnp.float32, jnp.bfloat16
    Tn, Bn, Dn = smask_ref.shape            # (T, B, 2H)
    Hn = Dn // 2
    N = Tn * Bn

    # ---- bidirectional dynamic LSTM --------------------------------------
    # Hoisted input projection for BOTH directions and both time orders in one
    # bf16 matmul: row t*B+b of xcat is [x[b,t] | x[b,T-1-t]], wih packs fwd
    # weights in its first E rows / bwd weights in its last E rows, gate columns
    # interleaved [i_f,i_b,f_f,f_b,g_f,g_b,o_f,o_b]  ->  no per-step select.
    gsel = jnp.dot(xcat_ref[...], wih_ref[...],
                   preferred_element_type=f32) + bias_ref[...]        # (T*B, 8H)

    whh = whh_ref[...]                       # (2H, 8H) bf16, block-diagonal
    h = jnp.zeros((Bn, Dn), f32)             # [h_fwd | h_bwd]
    c = jnp.zeros((Bn, Dn), f32)

    for t in range(Tn):                      # fully unrolled; T is small & static
        tr = Tn - 1 - t                      # backward direction walks time reversed
        gates = gsel[t * Bn:(t + 1) * Bn, :] + jnp.dot(
            h.astype(bf16), whh, preferred_element_type=f32)          # (B, 8H)
        i_g = _sigmoid(gates[:, 0 * Dn:1 * Dn])
        f_g = _sigmoid(gates[:, 1 * Dn:2 * Dn])
        g_g = jnp.tanh(gates[:, 2 * Dn:3 * Dn])
        o_g = _sigmoid(gates[:, 3 * Dn:4 * Dn])
        c_new = f_g * c + i_g * g_g
        h_new = o_g * jnp.tanh(c_new)

        m = smask_ref[t]                     # (B, 2H): [valid[t] | valid[T-1-t]]
        hm = m * h_new                       # packed-LSTM: padded steps emit zeros
        h = hm + (1.0 - m) * h               # ... and hold the previous state
        c = m * c_new + (1.0 - m) * c
        # exactly two full-batch stores per step into the time-major scratch
        tout_ref[t * Bn:(t + 1) * Bn, 0:Hn] = hm[:, 0:Hn]       # forward @ t
        tout_ref[tr * Bn:(tr + 1) * Bn, Hn:Dn] = hm[:, Hn:Dn]   # backward @ T-1-t

    # ---- reorder text_out to batch-major (B*T, D) via one tiny 0/1 matmul --
    x_big = jnp.dot(perm_ref[...], tout_ref[...], preferred_element_type=f32)

    # ---- batched GraphConvolution + relu + aspect mask (one matmul per stage)
    hidden = jnp.dot((posw_ref[...] * x_big).astype(bf16), wg_ref[...],
                     preferred_element_type=f32)                      # (B*T, D)
    gcn = jnp.dot(adjn_ref[...], hidden,
                  preferred_element_type=f32) + bg_ref[...]           # block-diag adj
    act = amask_ref[...] * jnp.maximum(gcn, 0.0)                      # relu + mask

    # ---- attention pooling (colsum-first: sum_i act_i . x_j) + fc ----------
    pooled = []
    for b in range(Bn):
        xb = x_big[b * Tn:(b + 1) * Tn, :]                            # (T, D)
        s = jnp.sum(act[b * Tn:(b + 1) * Tn, :], axis=0, keepdims=True)   # (1, D)
        logits = jax.lax.dot_general(s, xb, (((1,), (1,)), ((), ())),
                                     preferred_element_type=f32)      # (1, T)
        e = jnp.exp(logits - jnp.max(logits, axis=-1, keepdims=True))
        alpha = e / jnp.sum(e, axis=-1, keepdims=True)                # exact softmax
        pooled.append(jnp.dot(alpha, xb, preferred_element_type=f32))  # (1, D)
    pooled = jnp.concatenate(pooled, axis=0)                          # (B, D)

    out_ref[...] = (jnp.dot(pooled, wf_ref[...], preferred_element_type=f32)
                    + bf_ref[...])                                    # (B, PPAD)


# ---------------------------------------------------------------------------
# Wrapper-side weight packing for the merged bidirectional LSTM.
# ---------------------------------------------------------------------------
def _interleave_gate_cols(bf, bb, hn):
    # (1, 4H) fwd + (1, 4H) bwd (PyTorch gate order i,f,g,o)
    #   -> (1, 8H) with columns [i_f,i_b,f_f,f_b,g_f,g_b,o_f,o_b]
    blocks = []
    for k in range(4):
        blocks.append(bf[:, k * hn:(k + 1) * hn])
        blocks.append(bb[:, k * hn:(k + 1) * hn])
    return jnp.concatenate(blocks, axis=1)


def _merge_bidir(wf, wb, hn):
    # (Rf, 4H) fwd + (Rb, 4H) bwd -> (Rf+Rb, 8H) block matrix: the first Rf rows
    # feed only the interleaved fwd gate columns, the last Rb rows only the bwd
    # columns.  Used for both W_ih (Rf=Rb=E) and the block-diagonal W_hh (=H).
    rf, rb = wf.shape[0], wb.shape[0]
    zf = jnp.zeros((rf, hn), jnp.float32)
    zb = jnp.zeros((rb, hn), jnp.float32)
    blocks = []
    for k in range(4):
        blocks.append(jnp.concatenate([wf[:, k * hn:(k + 1) * hn], zb], axis=0))
        blocks.append(jnp.concatenate([zf, wb[:, k * hn:(k + 1) * hn]], axis=0))
    return jnp.concatenate(blocks, axis=1)


# ---------------------------------------------------------------------------
# Glue: lengths, position weight and aspect mask (matches the Python loops in
# GCN.position_weight / GCN.mask) — data-dependent scalar math, plain JAX.
# ---------------------------------------------------------------------------
def _lengths_and_weights(text_indices, aspect_indices, left_indices):
    text_len = jnp.sum(text_indices != 0, axis=-1)
    aspect_len = jnp.sum(aspect_indices != 0, axis=-1)
    left_len = jnp.sum(left_indices != 0, axis=-1)
    a0 = left_len
    a1 = left_len + aspect_len - 1
    j = jnp.arange(T)[None, :]
    cl = (text_len - aspect_len)[:, None].astype(jnp.float32)
    a0b, a1b, tl = a0[:, None], a1[:, None], text_len[:, None]
    posw = jnp.where(
        j < a0b, 1.0 - (a0b - j).astype(jnp.float32) / cl,
        jnp.where(j <= a1b, 0.0,
                  jnp.where(j < tl, 1.0 - (j - a1b).astype(jnp.float32) / cl, 0.0)))
    mask = ((j >= a0b) & (j <= a1b)).astype(jnp.float32)
    return text_len, posw[:, :, None], mask[:, :, None]


def gcn_forward(params, text_indices, aspect_indices, left_indices, adj):
    bf16 = jnp.bfloat16
    text_len, posw, amask = _lengths_and_weights(text_indices, aspect_indices, left_indices)

    # embedding lookup (gather) + dropout (inference => identity)
    text = jnp.take(params["embedding"], text_indices, axis=0).astype(jnp.float32)  # (B,T,E)
    x_tm = jnp.transpose(text, (1, 0, 2))                                            # (T,B,E)
    # row t*B+b = [x[b,t] | x[b,T-1-t]] so both directions' input projections are
    # one matmul and the per-step fwd/bwd select disappears from the recurrence.
    xcat = jnp.concatenate([x_tm, x_tm[::-1]], axis=-1).reshape(T * B, 2 * E)        # (T*B,2E)

    valid = (jnp.arange(T)[:, None] < text_len[None, :]).astype(jnp.float32)         # (T,B)
    step_mask = jnp.concatenate(
        [jnp.broadcast_to(valid[:, :, None], (T, B, H)),        # fwd valid at t
         jnp.broadcast_to(valid[::-1, :, None], (T, B, H))],    # bwd valid at T-1-t
        axis=2)                                                 # (T,B,2H)

    wih_cat = _merge_bidir(params["wih_f"], params["wih_b"], H)       # (2E, 8H)
    whh_bd = _merge_bidir(params["whh_f"], params["whh_b"], H)        # (2H, 8H)
    bias = _interleave_gate_cols(params["b_f"], params["b_b"], H)     # (1, 8H)

    # pre-broadcast position weights / aspect mask to (B*T, D), batch-major
    posw_big = jnp.broadcast_to(posw, (B, T, D)).reshape(B * T, D)
    amask_big = jnp.broadcast_to(amask, (B, T, D)).reshape(B * T, D)

    # pre-normalized block-diagonal adjacency (B*T, B*T), batch-major
    adjf = adj.astype(jnp.float32)
    adjn = adjf / (jnp.sum(adjf, axis=2, keepdims=True) + 1.0)
    adj_big = jnp.zeros((B * T, B * T), jnp.float32)
    for b in range(B):
        adj_big = adj_big.at[b * T:(b + 1) * T, b * T:(b + 1) * T].set(adjn[b])

    # time-major (t*B+b) -> batch-major (b*T+t) permutation, applied in-kernel
    rows = jnp.arange(B * T)
    src = (rows % T) * B + (rows // T)
    perm = jax.nn.one_hot(src, B * T, dtype=jnp.float32)              # (B*T, T*B)

    wf_pad = jnp.zeros((D, PPAD), jnp.float32).at[:, :P].set(params["w_fc"])
    bf_pad = jnp.zeros((1, PPAD), jnp.float32).at[:, :P].set(params["b_fc"])

    out = pl.pallas_call(
        gcn_fused_kernel,
        out_shape=jax.ShapeDtypeStruct((B, PPAD), jnp.float32),
        scratch_shapes=[pltpu.VMEM((T * B, D), jnp.float32)],         # text_out (time-major)
    )(xcat.astype(bf16), step_mask, posw_big, amask_big, adj_big, perm,
      wih_cat.astype(bf16), whh_bd.astype(bf16), bias,
      params["w_gcn"].astype(bf16), params["b_gcn"], wf_pad, bf_pad)
    return out[:, :P]


# ---------------------------------------------------------------------------
# Pure-JAX reference (same math, all f32) for a sanity check.
# ---------------------------------------------------------------------------
def reference_forward(params, text_indices, aspect_indices, left_indices, adj):
    text_len, posw, mask = _lengths_and_weights(text_indices, aspect_indices, left_indices)
    text = jnp.take(params["embedding"], text_indices, axis=0).astype(jnp.float32)
    x_tm = jnp.transpose(text, (1, 0, 2))
    valid = (jnp.arange(T)[:, None] < text_len[None, :]).astype(jnp.float32)[:, :, None]

    def sig(x):
        return 1.0 / (1.0 + jnp.exp(-x))

    def lstm_scan(x_tm, valid, wih, whh, b):
        def step(carry, inp):
            h, c = carry
            x_t, m = inp
            gates = x_t @ wih + h @ whh + b
            i = sig(gates[:, :H]); f = sig(gates[:, H:2 * H])
            g = jnp.tanh(gates[:, 2 * H:3 * H]); o = sig(gates[:, 3 * H:])
            c_new = f * c + i * g
            h_new = o * jnp.tanh(c_new)
            return (m * h_new + (1 - m) * h, m * c_new + (1 - m) * c), m * h_new
        init = (jnp.zeros((B, H), jnp.float32), jnp.zeros((B, H), jnp.float32))
        _, outs = jax.lax.scan(step, init, (x_tm, valid))
        return outs

    out_f = lstm_scan(x_tm, valid, params["wih_f"], params["whh_f"], params["b_f"])
    out_b = jnp.flip(lstm_scan(jnp.flip(x_tm, 0), jnp.flip(valid, 0),
                               params["wih_b"], params["whh_b"], params["b_b"]), 0)
    text_out = jnp.transpose(jnp.concatenate([out_f, out_b], -1), (1, 0, 2))

    adj = adj.astype(jnp.float32)
    hidden = jnp.einsum('btd,de->bte', posw * text_out, params["w_gcn"])
    denom = jnp.sum(adj, axis=2, keepdims=True) + 1.0
    gcn = jnp.einsum('bts,bsd->btd', adj, hidden) / denom + params["b_gcn"]
    out = jnp.maximum(gcn, 0.0) * mask
    alpha_mat = jnp.einsum('btd,bsd->bts', out, text_out)
    alpha = jax.nn.softmax(jnp.sum(alpha_mat, axis=1, keepdims=True), axis=2)
    pooled = jnp.einsum('bos,bsd->bod', alpha, text_out)[:, 0, :]
    return pooled @ params["w_fc"] + params["b_fc"][0]


if __name__ == "__main__":
    key = jax.random.PRNGKey(0)
    ks = jax.random.split(key, 12)

    def init(k, shape, scale):
        return (scale * jax.random.normal(k, shape)).astype(jnp.float32)

    params = {
        "embedding": init(ks[0], (VOCAB, E), 1.0),
        "wih_f": init(ks[1], (E, 4 * H), 0.2),
        "whh_f": init(ks[2], (H, 4 * H), 0.2),
        "b_f":   init(ks[3], (1, 4 * H), 0.1),
        "wih_b": init(ks[4], (E, 4 * H), 0.2),
        "whh_b": init(ks[5], (H, 4 * H), 0.2),
        "b_b":   init(ks[6], (1, 4 * H), 0.1),
        "w_gcn": init(ks[7], (D, D), 0.1),
        "b_gcn": init(ks[8], (1, D), 0.1),
        "w_fc":  init(ks[9], (D, P), 0.1),
        "b_fc":  init(ks[10], (1, P), 0.1),
    }

    # deterministic inputs: batch0 has 8 valid tokens, batch1 has 6
    text_lengths = jnp.array([8, 6], dtype=jnp.int32)
    text_indices = jax.random.randint(ks[11], (B, T), 1, VOCAB, dtype=jnp.int32)
    text_indices = jnp.where(jnp.arange(T)[None, :] < text_lengths[:, None], text_indices, 0)
    aspect_indices = jnp.array([[5, 6, 0, 0], [7, 8, 0, 0]], dtype=jnp.int32)  # aspect_len 2,2
    left_indices = jnp.array([[3, 4, 0, 0], [2, 0, 0, 0]], dtype=jnp.int32)    # left_len  2,1

    # 0/1 adjacency with self loops, zeroed outside valid length
    adj = (jax.random.uniform(jax.random.PRNGKey(42), (B, T, T)) > 0.5).astype(jnp.float32)
    adj = jnp.minimum(adj + jnp.eye(T, dtype=jnp.float32)[None], 1.0)
    valid_bt = (jnp.arange(T)[None, :] < text_lengths[:, None]).astype(jnp.float32)
    adj = adj * valid_bt[:, :, None] * valid_bt[:, None, :]

    out = gcn_forward(params, text_indices, aspect_indices, left_indices, adj)
    out = jax.block_until_ready(out)                                  # (B, P) = (2, 3)

    ref = reference_forward(params, text_indices, aspect_indices, left_indices, adj)
    # tolerance covers bf16 MXU operands (f32 accumulation) in the fused kernel
    np.testing.assert_allclose(np.asarray(out), np.asarray(ref), rtol=2e-2, atol=2e-2)

    # TODO(synk): torch Dropout is training-mode stochastic; here it is inference identity.
    print("KERNEL_OK")
</pallas_src>

<mosaic_0001>
module attributes {stable_mosaic.version = 11 : i64} {
  func.func @gcn_fused_kernel(%arg0: memref<16x64xbf16, #tpu.memory_space<vmem>>, %arg1: memref<8x2x64xf32, #tpu.memory_space<vmem>>, %arg2: memref<16x64xf32, #tpu.memory_space<vmem>>, %arg3: memref<16x64xf32, #tpu.memory_space<vmem>>, %arg4: memref<16x16xf32, #tpu.memory_space<vmem>>, %arg5: memref<16x16xf32, #tpu.memory_space<vmem>>, %arg6: memref<64x256xbf16, #tpu.memory_space<vmem>>, %arg7: memref<64x256xbf16, #tpu.memory_space<vmem>>, %arg8: memref<1x256xf32, #tpu.memory_space<vmem>>, %arg9: memref<64x64xbf16, #tpu.memory_space<vmem>>, %arg10: memref<1x64xf32, #tpu.memory_space<vmem>>, %arg11: memref<64x128xf32, #tpu.memory_space<vmem>>, %arg12: memref<1x128xf32, #tpu.memory_space<vmem>>, %arg13: memref<2x128xf32, #tpu.memory_space<vmem>>, %arg14: memref<16x64xf32, #tpu.memory_space<vmem>>) attributes {dimension_semantics = [], scalar_prefetch = 0 : i64, scratch_operands = 1 : i64, tpu.core_type = #tpu.core_type<tc>} {
    %c0 = arith.constant 0 : index
    %c0_0 = arith.constant 0 : index
    %0 = vector.load %arg0[%c0, %c0_0] : memref<16x64xbf16, #tpu.memory_space<vmem>>, vector<16x64xbf16>
    %c0_1 = arith.constant 0 : index
    %c0_2 = arith.constant 0 : index
    %1 = vector.load %arg6[%c0_1, %c0_2] : memref<64x256xbf16, #tpu.memory_space<vmem>>, vector<64x256xbf16>
    %cst = arith.constant dense<0.000000e+00> : vector<16x256xf32>
    %2 = tpu.matmul %0, %1, %cst {dimension_numbers = #tpu.dot_dimension_numbers<[1], [0], [0], [1], [0, 0, 1, 1], [], []>} : vector<16x64xbf16>, vector<64x256xbf16>, vector<16x256xf32> -> vector<16x256xf32>
    %c0_3 = arith.constant 0 : index
    %c0_4 = arith.constant 0 : index
    %3 = vector.load %arg8[%c0_3, %c0_4] : memref<1x256xf32, #tpu.memory_space<vmem>>, vector<1x256xf32>
    %4 = vector.broadcast %3 : vector<1x256xf32> to vector<16x256xf32>
    %5 = arith.addf %2, %4 : vector<16x256xf32>
    %c0_5 = arith.constant 0 : index
    %c0_6 = arith.constant 0 : index
    %6 = vector.load %arg7[%c0_5, %c0_6] : memref<64x256xbf16, #tpu.memory_space<vmem>>, vector<64x256xbf16>
    %cst_7 = arith.constant 0.000000e+00 : f32
    %7 = vector.broadcast %cst_7 : f32 to vector<2x64xf32>
    %cst_8 = arith.constant 0.000000e+00 : f32
    %8 = vector.broadcast %cst_8 : f32 to vector<2x64xf32>
    %9 = vector.extract_strided_slice %5 {offsets = [0, 0], sizes = [2, 256], strides = [1, 1]} : vector<16x256xf32> to vector<2x256xf32>
    %10 = arith.truncf %7 : vector<2x64xf32> to vector<2x64xbf16>
    %cst_9 = arith.constant dense<0.000000e+00> : vector<2x256xf32>
    %11 = tpu.matmul %10, %6, %cst_9 {dimension_numbers = #tpu.dot_dimension_numbers<[1], [0], [0], [1], [0, 0, 1, 1], [], []>} : vector<2x64xbf16>, vector<64x256xbf16>, vector<2x256xf32> -> vector<2x256xf32>
    %12 = arith.addf %9, %11 : vector<2x256xf32>
    %13 = vector.extract_strided_slice %12 {offsets = [0, 0], sizes = [2, 64], strides = [1, 1]} : vector<2x256xf32> to vector<2x64xf32>
    %cst_10 = arith.constant 5.000000e-01 : f32
    %14 = vector.broadcast %cst_10 : f32 to vector<2x64xf32>
    %15 = arith.mulf %14, %13 : vector<2x64xf32>
    %16 = math.tanh %15 : vector<2x64xf32>
    %cst_11 = arith.constant 1.000000e+00 : f32
    %17 = vector.broadcast %cst_11 : f32 to vector<2x64xf32>
    %18 = arith.addf %16, %17 : vector<2x64xf32>
    %cst_12 = arith.constant 5.000000e-01 : f32
    %19 = vector.broadcast %cst_12 : f32 to vector<2x64xf32>
    %20 = arith.mulf %19, %18 : vector<2x64xf32>
    %21 = vector.extract_strided_slice %12 {offsets = [0, 64], sizes = [2, 64], strides = [1, 1]} : vector<2x256xf32> to vector<2x64xf32>
    %cst_13 = arith.constant 5.000000e-01 : f32
    %22 = vector.broadcast %cst_13 : f32 to vector<2x64xf32>
    %23 = arith.mulf %22, %21 : vector<2x64xf32>
    %24 = math.tanh %23 : vector<2x64xf32>
    %cst_14 = arith.constant 1.000000e+00 : f32
    %25 = vector.broadcast %cst_14 : f32 to vector<2x64xf32>
    %26 = arith.addf %24, %25 : vector<2x64xf32>
    %cst_15 = arith.constant 5.000000e-01 : f32
    %27 = vector.broadcast %cst_15 : f32 to vector<2x64xf32>
    %28 = arith.mulf %27, %26 : vector<2x64xf32>
    %29 = vector.extract_strided_slice %12 {offsets = [0, 128], sizes = [2, 64], strides = [1, 1]} : vector<2x256xf32> to vector<2x64xf32>
    %30 = math.tanh %29 : vector<2x64xf32>
    %31 = vector.extract_strided_slice %12 {offsets = [0, 192], sizes = [2, 64], strides = [1, 1]} : vector<2x256xf32> to vector<2x64xf32>
    %cst_16 = arith.constant 5.000000e-01 : f32
    %32 = vector.broadcast %cst_16 : f32 to vector<2x64xf32>
    %33 = arith.mulf %32, %31 : vector<2x64xf32>
    %34 = math.tanh %33 : vector<2x64xf32>
    %cst_17 = arith.constant 1.000000e+00 : f32
    %35 = vector.broadcast %cst_17 : f32 to vector<2x64xf32>
    %36 = arith.addf %34, %35 : vector<2x64xf32>
    %cst_18 = arith.constant 5.000000e-01 : f32
    %37 = vector.broadcast %cst_18 : f32 to vector<2x64xf32>
    %38 = arith.mulf %37, %36 : vector<2x64xf32>
    %39 = arith.mulf %28, %8 : vector<2x64xf32>
    %40 = arith.mulf %20, %30 : vector<2x64xf32>
    %41 = arith.addf %39, %40 : vector<2x64xf32>
    %42 = math.tanh %41 : vector<2x64xf32>
    %43 = arith.mulf %38, %42 : vector<2x64xf32>
    %c0_19 = arith.constant 0 : index
    %c0_20 = arith.constant 0 : index
    %c0_21 = arith.constant 0 : index
    %44 = vector.load %arg1[%c0_19, %c0_20, %c0_21] : memref<8x2x64xf32, #tpu.memory_space<vmem>>, vector<1x2x64xf32>
    %45 = vector.shape_cast %44 : vector<1x2x64xf32> to vector<2x64xf32>
    %46 = arith.mulf %45, %43 : vector<2x64xf32>
    %cst_22 = arith.constant 1.000000e+00 : f32
    %47 = vector.broadcast %cst_22 : f32 to vector<2x64xf32>
    %48 = arith.subf %47, %45 : vector<2x64xf32>
    %49 = arith.mulf %48, %7 : vector<2x64xf32>
    %50 = arith.addf %46, %49 : vector<2x64xf32>
    %51 = arith.mulf %45, %41 : vector<2x64xf32>
    %cst_23 = arith.constant 1.000000e+00 : f32
    %52 = vector.broadcast %cst_23 : f32 to vector<2x64xf32>
    %53 = arith.subf %52, %45 : vector<2x64xf32>
    %54 = arith.mulf %53, %8 : vector<2x64xf32>
    %55 = arith.addf %51, %54 : vector<2x64xf32>
    %56 = vector.extract_strided_slice %46 {offsets = [0, 0], sizes = [2, 32], strides = [1, 1]} : vector<2x64xf32> to vector<2x32xf32>
    %c0_24 = arith.constant 0 : index
    %c0_25 = arith.constant 0 : index
    %57 = vector.load %arg14[%c0_24, %c0_25] : memref<16x64xf32, #tpu.memory_space<vmem>>, vector<2x32xf32>
    tpu.vector_store %arg14[%c0_24, %c0_25], %56 {strides = array<i32>} : memref<16x64xf32, #tpu.memory_space<vmem>>, vector<2x32xf32>,
    %58 = vector.extract_strided_slice %46 {offsets = [0, 32], sizes = [2, 32], strides = [1, 1]} : vector<2x64xf32> to vector<2x32xf32>
    %c14 = arith.constant 14 : index
    %c32 = arith.constant 32 : index
    %59 = vector.load %arg14[%c14, %c32] : memref<16x64xf32, #tpu.memory_space<vmem>>, vector<2x32xf32>
    tpu.vector_store %arg14[%c14, %c32], %58 {strides = array<i32>} : memref<16x64xf32, #tpu.memory_space<vmem>>, vector<2x32xf32>,
    %60 = vector.extract_strided_slice %5 {offsets = [2, 0], sizes = [2, 256], strides = [1, 1]} : vector<16x256xf32> to vector<2x256xf32>
    %61 = arith.truncf %50 : vector<2x64xf32> to vector<2x64xbf16>
    %cst_26 = arith.constant dense<0.000000e+00> : vector<2x256xf32>
    %62 = tpu.matmul %61, %6, %cst_26 {dimension_numbers = #tpu.dot_dimension_numbers<[1], [0], [0], [1], [0, 0, 1, 1], [], []>} : vector<2x64xbf16>, vector<64x256xbf16>, vector<2x256xf32> -> vector<2x256xf32>
    %63 = arith.addf %60, %62 : vector<2x256xf32>
    %64 = vector.extract_strided_slice %63 {offsets = [0, 0], sizes = [2, 64], strides = [1, 1]} : vector<2x256xf32> to vector<2x64xf32>
    %cst_27 = arith.constant 5.000000e-01 : f32
    %65 = vector.broadcast %cst_27 : f32 to vector<2x64xf32>
    %66 = arith.mulf %65, %64 : vector<2x64xf32>
    %67 = math.tanh %66 : vector<2x64xf32>
    %cst_28 = arith.constant 1.000000e+00 : f32
    %68 = vector.broadcast %cst_28 : f32 to vector<2x64xf32>
    %69 = arith.addf %67, %68 : vector<2x64xf32>
    %cst_29 = arith.constant 5.000000e-01 : f32
    %70 = vector.broadcast %cst_29 : f32 to vector<2x64xf32>
    %71 = arith.mulf %70, %69 : vector<2x64xf32>
    %72 = vector.extract_strided_slice %63 {offsets = [0, 64], sizes = [2, 64], strides = [1, 1]} : vector<2x256xf32> to vector<2x64xf32>
    %cst_30 = arith.constant 5.000000e-01 : f32
    %73 = vector.broadcast %cst_30 : f32 to vector<2x64xf32>
    %74 = arith.mulf %73, %72 : vector<2x64xf32>
    %75 = math.tanh %74 : vector<2x64xf32>
    %cst_31 = arith.constant 1.000000e+00 : f32
    %76 = vector.broadcast %cst_31 : f32 to vector<2x64xf32>
    %77 = arith.addf %75, %76 : vector<2x64xf32>
    %cst_32 = arith.constant 5.000000e-01 : f32
    %78 = vector.broadcast %cst_32 : f32 to vector<2x64xf32>
    %79 = arith.mulf %78, %77 : vector<2x64xf32>
    %80 = vector.extract_strided_slice %63 {offsets = [0, 128], sizes = [2, 64], strides = [1, 1]} : vector<2x256xf32> to vector<2x64xf32>
    %81 = math.tanh %80 : vector<2x64xf32>
    %82 = vector.extract_strided_slice %63 {offsets = [0, 192], sizes = [2, 64], strides = [1, 1]} : vector<2x256xf32> to vector<2x64xf32>
    %cst_33 = arith.constant 5.000000e-01 : f32
    %83 = vector.broadcast %cst_33 : f32 to vector<2x64xf32>
    %84 = arith.mulf %83, %82 : vector<2x64xf32>
    %85 = math.tanh %84 : vector<2x64xf32>
    %cst_34 = arith.constant 1.000000e+00 : f32
    %86 = vector.broadcast %cst_34 : f32 to vector<2x64xf32>
    %87 = arith.addf %85, %86 : vector<2x64xf32>
    %cst_35 = arith.constant 5.000000e-01 : f32
    %88 = vector.broadcast %cst_35 : f32 to vector<2x64xf32>
    %89 = arith.mulf %88, %87 : vector<2x64xf32>
    %90 = arith.mulf %79, %55 : vector<2x64xf32>
    %91 = arith.mulf %71, %81 : vector<2x64xf32>
    %92 = arith.addf %90, %91 : vector<2x64xf32>
    %93 = math.tanh %92 : vector<2x64xf32>
    %94 = arith.mulf %89, %93 : vector<2x64xf32>
    %c1 = arith.constant 1 : index
    %c0_36 = arith.constant 0 : index
    %c0_37 = arith.constant 0 : index
    %95 = vector.load %arg1[%c1, %c0_36, %c0_37] : memref<8x2x64xf32, #tpu.memory_space<vmem>>, vector<1x2x64xf32>
    %96 = vector.shape_cast %95 : vector<1x2x64xf32> to vector<2x64xf32>
    %97 = arith.mulf %96, %94 : vector<2x64xf32>
    %cst_38 = arith.constant 1.000000e+00 : f32
    %98 = vector.broadcast %cst_38 : f32 to vector<2x64xf32>
    %99 = arith.subf %98, %96 : vector<2x64xf32>
    %100 = arith.mulf %99, %50 : vector<2x64xf32>
    %101 = arith.addf %97, %100 : vector<2x64xf32>
    %102 = arith.mulf %96, %92 : vector<2x64xf32>
    %cst_39 = arith.constant 1.000000e+00 : f32
    %103 = vector.broadcast %cst_39 : f32 to vector<2x64xf32>
    %104 = arith.subf %103, %96 : vector<2x64xf32>
    %105 = arith.mulf %104, %55 : vector<2x64xf32>
    %106 = arith.addf %102, %105 : vector<2x64xf32>
    %107 = vector.extract_strided_slice %97 {offsets = [0, 0], sizes = [2, 32], strides = [1, 1]} : vector<2x64xf32> to vector<2x32xf32>
    %c2 = arith.constant 2 : index
    %c0_40 = arith.constant 0 : index
    %108 = vector.load %arg14[%c2, %c0_40] : memref<16x64xf32, #tpu.memory_space<vmem>>, vector<2x32xf32>
    tpu.vector_store %arg14[%c2, %c0_40], %107 {strides = array<i32>} : memref<16x64xf32, #tpu.memory_space<vmem>>, vector<2x32xf32>,
    %109 = vector.extract_strided_slice %97 {offsets = [0, 32], sizes = [2, 32], strides = [1, 1]} : vector<2x64xf32> to vector<2x32xf32>
    %c12 = arith.constant 12 : index
    %c32_41 = arith.constant 32 : index
    %110 = vector.load %arg14[%c12, %c32_41] : memref<16x64xf32, #tpu.memory_space<vmem>>, vector<2x32xf32>
    tpu.vector_store %arg14[%c12, %c32_41], %109 {strides = array<i32>} : memref<16x64xf32, #tpu.memory_space<vmem>>, vector<2x32xf32>,
    %111 = vector.extract_strided_slice %5 {offsets = [4, 0], sizes = [2, 256], strides = [1, 1]} : vector<16x256xf32> to vector<2x256xf32>
    %112 = arith.truncf %101 : vector<2x64xf32> to vector<2x64xbf16>
    %cst_42 = arith.constant dense<0.000000e+00> : vector<2x256xf32>
    %113 = tpu.matmul %112, %6, %cst_42 {dimension_numbers = #tpu.dot_dimension_numbers<[1], [0], [0], [1], [0, 0, 1, 1], [], []>} : vector<2x64xbf16>, vector<64x256xbf16>, vector<2x256xf32> -> vector<2x256xf32>
    %114 = arith.addf %111, %113 : vector<2x256xf32>
    %115 = vector.extract_strided_slice %114 {offsets = [0, 0], sizes = [2, 64], strides = [1, 1]} : vector<2x256xf32> to vector<2x64xf32>
    %cst_43 = arith.constant 5.000000e-01 : f32
    %116 = vector.broadcast %cst_43 : f32 to vector<2x64xf32>
    %117 = arith.mulf %116, %115 : vector<2x64xf32>
    %118 = math.tanh %117 : vector<2x64xf32>
    %cst_44 = arith.constant 1.000000e+00 : f32
    %119 = vector.broadcast %cst_44 : f32 to vector<2x64xf32>
    %120 = arith.addf %118, %119 : vector<2x64xf32>
    %cst_45 = arith.constant 5.000000e-01 : f32
    %121 = vector.broadcast %cst_45 : f32 to vector<2x64xf32>
    %122 = arith.mulf %121, %120 : vector<2x64xf32>
    %123 = vector.extract_strided_slice %114 {offsets = [0, 64], sizes = [2, 64], strides = [1, 1]} : vector<2x256xf32> to vector<2x64xf32>
    %cst_46 = arith.constant 5.000000e-01 : f32
    %124 = vector.broadcast %cst_46 : f32 to vector<2x64xf32>
    %125 = arith.mulf %124, %123 : vector<2x64xf32>
    %126 = math.tanh %125 : vector<2x64xf32>
    %cst_47 = arith.constant 1.000000e+00 : f32
    %127 = vector.broadcast %cst_47 : f32 to vector<2x64xf32>
    %128 = arith.addf %126, %127 : vector<2x64xf32>
    %cst_48 = arith.constant 5.000000e-01 : f32
    %129 = vector.broadcast %cst_48 : f32 to vector<2x64xf32>
    %130 = arith.mulf %129, %128 : vector<2x64xf32>
    %131 = vector.extract_strided_slice %114 {offsets = [0, 128], sizes = [2, 64], strides = [1, 1]} : vector<2x256xf32> to vector<2x64xf32>
    %132 = math.tanh %131 : vector<2x64xf32>
    %133 = vector.extract_strided_slice %114 {offsets = [0, 192], sizes = [2, 64], strides = [1, 1]} : vector<2x256xf32> to vector<2x64xf32>
    %cst_49 = arith.constant 5.000000e-01 : f32
    %134 = vector.broadcast %cst_49 : f32 to vector<2x64xf32>
    %135 = arith.mulf %134, %133 : vector<2x64xf32>
    %136 = math.tanh %135 : vector<2x64xf32>
    %cst_50 = arith.constant 1.000000e+00 : f32
    %137 = vector.broadcast %cst_50 : f32 to vector<2x64xf32>
    %138 = arith.addf %136, %137 : vector<2x64xf32>
    %cst_51 = arith.constant 5.000000e-01 : f32
    %139 = vector.broadcast %cst_51 : f32 to vector<2x64xf32>
    %140 = arith.mulf %139, %138 : vector<2x64xf32>
    %141 = arith.mulf %130, %106 : vector<2x64xf32>
    %142 = arith.mulf %122, %132 : vector<2x64xf32>
    %143 = arith.addf %141, %142 : vector<2x64xf32>
    %144 = math.tanh %143 : vector<2x64xf32>
    %145 = arith.mulf %140, %144 : vector<2x64xf32>
    %c2_52 = arith.constant 2 : index
    %c0_53 = arith.constant 0 : index
    %c0_54 = arith.constant 0 : index
    %146 = vector.load %arg1[%c2_52, %c0_53, %c0_54] : memref<8x2x64xf32, #tpu.memory_space<vmem>>, vector<1x2x64xf32>
    %147 = vector.shape_cast %146 : vector<1x2x64xf32> to vector<2x64xf32>
    %148 = arith.mulf %147, %145 : vector<2x64xf32>
    %cst_55 = arith.constant 1.000000e+00 : f32
    %149 = vector.broadcast %cst_55 : f32 to vector<2x64xf32>
    %150 = arith.subf %149, %147 : vector<2x64xf32>
    %151 = arith.mulf %150, %101 : vector<2x64xf32>
    %152 = arith.addf %148, %151 : vector<2x64xf32>
    %153 = arith.mulf %147, %143 : vector<2x64xf32>
    %cst_56 = arith.constant 1.000000e+00 : f32
    %154 = vector.broadcast %cst_56 : f32 to vector<2x64xf32>
    %155 = arith.subf %154, %147 : vector<2x64xf32>
    %156 = arith.mulf %155, %106 : vector<2x64xf32>
    %157 = arith.addf %153, %156 : vector<2x64xf32>
    %158 = vector.extract_strided_slice %148 {offsets = [0, 0], sizes = [2, 32], strides = [1, 1]} : vector<2x64xf32> to vector<2x32xf32>
    %c4 = arith.constant 4 : index
    %c0_57 = arith.constant 0 : index
    %159 = vector.load %arg14[%c4, %c0_57] : memref<16x64xf32, #tpu.memory_space<vmem>>, vector<2x32xf32>
    tpu.vector_store %arg14[%c4, %c0_57], %158 {strides = array<i32>} : memref<16x64xf32, #tpu.memory_space<vmem>>, vector<2x32xf32>,
    %160 = vector.extract_strided_slice %148 {offsets = [0, 32], sizes = [2, 32], strides = [1, 1]} : vector<2x64xf32> to vector<2x32xf32>
    %c10 = arith.constant 10 : index
    %c32_58 = arith.constant 32 : index
    %161 = vector.load %arg14[%c10, %c32_58] : memref<16x64xf32, #tpu.memory_space<vmem>>, vector<2x32xf32>
    tpu.vector_store %arg14[%c10, %c32_58], %160 {strides = array<i32>} : memref<16x64xf32, #tpu.memory_space<vmem>>, vector<2x32xf32>,
    %162 = vector.extract_strided_slice %5 {offsets = [6, 0], sizes = [2, 256], strides = [1, 1]} : vector<16x256xf32> to vector<2x256xf32>
    %163 = arith.truncf %152 : vector<2x64xf32> to vector<2x64xbf16>
    %cst_59 = arith.constant dense<0.000000e+00> : vector<2x256xf32>
    %164 = tpu.matmul %163, %6, %cst_59 {dimension_numbers = #tpu.dot_dimension_numbers<[1], [0], [0], [1], [0, 0, 1, 1], [], []>} : vector<2x64xbf16>, vector<64x256xbf16>, vector<2x256xf32> -> vector<2x256xf32>
    %165 = arith.addf %162, %164 : vector<2x256xf32>
    %166 = vector.extract_strided_slice %165 {offsets = [0, 0], sizes = [2, 64], strides = [1, 1]} : vector<2x256xf32> to vector<2x64xf32>
    %cst_60 = arith.constant 5.000000e-01 : f32
    %167 = vector.broadcast %cst_60 : f32 to vector<2x64xf32>
    %168 = arith.mulf %167, %166 : vector<2x64xf32>
    %169 = math.tanh %168 : vector<2x64xf32>
    %cst_61 = arith.constant 1.000000e+00 : f32
    %170 = vector.broadcast %cst_61 : f32 to vector<2x64xf32>
    %171 = arith.addf %169, %170 : vector<2x64xf32>
    %cst_62 = arith.constant 5.000000e-01 : f32
    %172 = vector.broadcast %cst_62 : f32 to vector<2x64xf32>
    %173 = arith.mulf %172, %171 : vector<2x64xf32>
    %174 = vector.extract_strided_slice %165 {offsets = [0, 64], sizes = [2, 64], strides = [1, 1]} : vector<2x256xf32> to vector<2x64xf32>
    %cst_63 = arith.constant 5.000000e-01 : f32
    %175 = vector.broadcast %cst_63 : f32 to vector<2x64xf32>
    %176 = arith.mulf %175, %174 : vector<2x64xf32>
    %177 = math.tanh %176 : vector<2x64xf32>
    %cst_64 = arith.constant 1.000000e+00 : f32
    %178 = vector.broadcast %cst_64 : f32 to vector<2x64xf32>
    %179 = arith.addf %177, %178 : vector<2x64xf32>
    %cst_65 = arith.constant 5.000000e-01 : f32
    %180 = vector.broadcast %cst_65 : f32 to vector<2x64xf32>
    %181 = arith.mulf %180, %179 : vector<2x64xf32>
    %182 = vector.extract_strided_slice %165 {offsets = [0, 128], sizes = [2, 64], strides = [1, 1]} : vector<2x256xf32> to vector<2x64xf32>
    %183 = math.tanh %182 : vector<2x64xf32>
    %184 = vector.extract_strided_slice %165 {offsets = [0, 192], sizes = [2, 64], strides = [1, 1]} : vector<2x256xf32> to vector<2x64xf32>
    %cst_66 = arith.constant 5.000000e-01 : f32
    %185 = vector.broadcast %cst_66 : f32 to vector<2x64xf32>
    %186 = arith.mulf %185, %184 : vector<2x64xf32>
    %187 = math.tanh %186 : vector<2x64xf32>
    %cst_67 = arith.constant 1.000000e+00 : f32
    %188 = vector.broadcast %cst_67 : f32 to vector<2x64xf32>
    %189 = arith.addf %187, %188 : vector<2x64xf32>
    %cst_68 = arith.constant 5.000000e-01 : f32
    %190 = vector.broadcast %cst_68 : f32 to vector<2x64xf32>
    %191 = arith.mulf %190, %189 : vector<2x64xf32>
    %192 = arith.mulf %181, %157 : vector<2x64xf32>
    %193 = arith.mulf %173, %183 : vector<2x64xf32>
    %194 = arith.addf %192, %193 : vector<2x64xf32>
    %195 = math.tanh %194 : vector<2x64xf32>
    %196 = arith.mulf %191, %195 : vector<2x64xf32>
    %c3 = arith.constant 3 : index
    %c0_69 = arith.constant 0 : index
    %c0_70 = arith.constant 0 : index
    %197 = vector.load %arg1[%c3, %c0_69, %c0_70] : memref<8x2x64xf32, #tpu.memory_space<vmem>>, vector<1x2x64xf32>
    %198 = vector.shape_cast %197 : vector<1x2x64xf32> to vector<2x64xf32>
    %199 = arith.mulf %198, %196 : vector<2x64xf32>
    %cst_71 = arith.constant 1.000000e+00 : f32
    %200 = vector.broadcast %cst_71 : f32 to vector<2x64xf32>
    %201 = arith.subf %200, %198 : vector<2x64xf32>
    %202 = arith.mulf %201, %152 : vector<2x64xf32>
    %203 = arith.addf %199, %202 : vector<2x64xf32>
    %204 = arith.mulf %198, %194 : vector<2x64xf32>
    %cst_72 = arith.constant 1.000000e+00 : f32
    %205 = vector.broadcast %cst_72 : f32 to vector<2x64xf32>
    %206 = arith.subf %205, %198 : vector<2x64xf32>
    %207 = arith.mulf %206, %157 : vector<2x64xf32>
    %208 = arith.addf %204, %207 : vector<2x64xf32>
    %209 = vector.extract_strided_slice %199 {offsets = [0, 0], sizes = [2, 32], strides = [1, 1]} : vector<2x64xf32> to vector<2x32xf32>
    %c6 = arith.constant 6 : index
    %c0_73 = arith.constant 0 : index
    %210 = vector.load %arg14[%c6, %c0_73] : memref<16x64xf32, #tpu.memory_space<vmem>>, vector<2x32xf32>
    tpu.vector_store %arg14[%c6, %c0_73], %209 {strides = array<i32>} : memref<16x64xf32, #tpu.memory_space<vmem>>, vector<2x32xf32>,
    %211 = vector.extract_strided_slice %199 {offsets = [0, 32], sizes = [2, 32], strides = [1, 1]} : vector<2x64xf32> to vector<2x32xf32>
    %c8 = arith.constant 8 : index
    %c32_74 = arith.constant 32 : index
    %212 = vector.load %arg14[%c8, %c32_74] : memref<16x64xf32, #tpu.memory_space<vmem>>, vector<2x32xf32>
    tpu.vector_store %arg14[%c8, %c32_74], %211 {strides = array<i32>} : memref<16x64xf32, #tpu.memory_space<vmem>>, vector<2x32xf32>,
    %213 = vector.extract_strided_slice %5 {offsets = [8, 0], sizes = [2, 256], strides = [1, 1]} : vector<16x256xf32> to vector<2x256xf32>
    %214 = arith.truncf %203 : vector<2x64xf32> to vector<2x64xbf16>
    %cst_75 = arith.constant dense<0.000000e+00> : vector<2x256xf32>
    %215 = tpu.matmul %214, %6, %cst_75 {dimension_numbers = #tpu.dot_dimension_numbers<[1], [0], [0], [1], [0, 0, 1, 1], [], []>} : vector<2x64xbf16>, vector<64x256xbf16>, vector<2x256xf32> -> vector<2x256xf32>
    %216 = arith.addf %213, %215 : vector<2x256xf32>
    %217 = vector.extract_strided_slice %216 {offsets = [0, 0], sizes = [2, 64], strides = [1, 1]} : vector<2x256xf32> to vector<2x64xf32>
    %cst_76 = arith.constant 5.000000e-01 : f32
    %218 = vector.broadcast %cst_76 : f32 to vector<2x64xf32>
    %219 = arith.mulf %218, %217 : vector<2x64xf32>
    %220 = math.tanh %219 : vector<2x64xf32>
    %cst_77 = arith.constant 1.000000e+00 : f32
    %221 = vector.broadcast %cst_77 : f32 to vector<2x64xf32>
    %222 = arith.addf %220, %221 : vector<2x64xf32>
    %cst_78 = arith.constant 5.000000e-01 : f32
    %223 = vector.broadcast %cst_78 : f32 to vector<2x64xf32>
    %224 = arith.mulf %223, %222 : vector<2x64xf32>
    %225 = vector.extract_strided_slice %216 {offsets = [0, 64], sizes = [2, 64], strides = [1, 1]} : vector<2x256xf32> to vector<2x64xf32>
    %cst_79 = arith.constant 5.000000e-01 : f32
    %226 = vector.broadcast %cst_79 : f32 to vector<2x64xf32>
    %227 = arith.mulf %226, %225 : vector<2x64xf32>
    %228 = math.tanh %227 : vector<2x64xf32>
    %cst_80 = arith.constant 1.000000e+00 : f32
    %229 = vector.broadcast %cst_80 : f32 to vector<2x64xf32>
    %230 = arith.addf %228, %229 : vector<2x64xf32>
    %cst_81 = arith.constant 5.000000e-01 : f32
    %231 = vector.broadcast %cst_81 : f32 to vector<2x64xf32>
    %232 = arith.mulf %231, %230 : vector<2x64xf32>
    %233 = vector.extract_strided_slice %216 {offsets = [0, 128], sizes = [2, 64], strides = [1, 1]} : vector<2x256xf32> to vector<2x64xf32>
    %234 = math.tanh %233 : vector<2x64xf32>
    %235 = vector.extract_strided_slice %216 {offsets = [0, 192], sizes = [2, 64], strides = [1, 1]} : vector<2x256xf32> to vector<2x64xf32>
    %cst_82 = arith.constant 5.000000e-01 : f32
    %236 = vector.broadcast %cst_82 : f32 to vector<2x64xf32>
    %237 = arith.mulf %236, %235 : vector<2x64xf32>
    %238 = math.tanh %237 : vector<2x64xf32>
    %cst_83 = arith.constant 1.000000e+00 : f32
    %239 = vector.broadcast %cst_83 : f32 to vector<2x64xf32>
    %240 = arith.addf %238, %239 : vector<2x64xf32>
    %cst_84 = arith.constant 5.000000e-01 : f32
    %241 = vector.broadcast %cst_84 : f32 to vector<2x64xf32>
    %242 = arith.mulf %241, %240 : vector<2x64xf32>
    %243 = arith.mulf %232, %208 : vector<2x64xf32>
    %244 = arith.mulf %224, %234 : vector<2x64xf32>
    %245 = arith.addf %243, %244 : vector<2x64xf32>
    %246 = math.tanh %245 : vector<2x64xf32>
    %247 = arith.mulf %242, %246 : vector<2x64xf32>
    %c4_85 = arith.constant 4 : index
    %c0_86 = arith.constant 0 : index
    %c0_87 = arith.constant 0 : index
    %248 = vector.load %arg1[%c4_85, %c0_86, %c0_87] : memref<8x2x64xf32, #tpu.memory_space<vmem>>, vector<1x2x64xf32>
    %249 = vector.shape_cast %248 : vector<1x2x64xf32> to vector<2x64xf32>
    %250 = arith.mulf %249, %247 : vector<2x64xf32>
    %cst_88 = arith.constant 1.000000e+00 : f32
    %251 = vector.broadcast %cst_88 : f32 to vector<2x64xf32>
    %252 = arith.subf %251, %249 : vector<2x64xf32>
    %253 = arith.mulf %252, %203 : vector<2x64xf32>
    %254 = arith.addf %250, %253 : vector<2x64xf32>
    %255 = arith.mulf %249, %245 : vector<2x64xf32>
    %cst_89 = arith.constant 1.000000e+00 : f32
    %256 = vector.broadcast %cst_89 : f32 to vector<2x64xf32>
    %257 = arith.subf %256, %249 : vector<2x64xf32>
    %258 = arith.mulf %257, %208 : vector<2x64xf32>
    %259 = arith.addf %255, %258 : vector<2x64xf32>
    %260 = vector.extract_strided_slice %250 {offsets = [0, 0], sizes = [2, 32], strides = [1, 1]} : vector<2x64xf32> to vector<2x32xf32>
    %c8_90 = arith.constant 8 : index
    %c0_91 = arith.constant 0 : index
    %261 = vector.load %arg14[%c8_90, %c0_91] : memref<16x64xf32, #tpu.memory_space<vmem>>, vector<2x32xf32>
    tpu.vector_store %arg14[%c8_90, %c0_91], %260 {strides = array<i32>} : memref<16x64xf32, #tpu.memory_space<vmem>>, vector<2x32xf32>,
    %262 = vector.extract_strided_slice %250 {offsets = [0, 32], sizes = [2, 32], strides = [1, 1]} : vector<2x64xf32> to vector<2x32xf32>
    %c6_92 = arith.constant 6 : index
    %c32_93 = arith.constant 32 : index
    %263 = vector.load %arg14[%c6_92, %c32_93] : memref<16x64xf32, #tpu.memory_space<vmem>>, vector<2x32xf32>
    tpu.vector_store %arg14[%c6_92, %c32_93], %262 {strides = array<i32>} : memref<16x64xf32, #tpu.memory_space<vmem>>, vector<2x32xf32>,
    %264 = vector.extract_strided_slice %5 {offsets = [10, 0], sizes = [2, 256], strides = [1, 1]} : vector<16x256xf32> to vector<2x256xf32>
    %265 = arith.truncf %254 : vector<2x64xf32> to vector<2x64xbf16>
    %cst_94 = arith.constant dense<0.000000e+00> : vector<2x256xf32>
    %266 = tpu.matmul %265, %6, %cst_94 {dimension_numbers = #tpu.dot_dimension_numbers<[1], [0], [0], [1], [0, 0, 1, 1], [], []>} : vector<2x64xbf16>, vector<64x256xbf16>, vector<2x256xf32> -> vector<2x256xf32>
    %267 = arith.addf %264, %266 : vector<2x256xf32>
    %268 = vector.extract_strided_slice %267 {offsets = [0, 0], sizes = [2, 64], strides = [1, 1]} : vector<2x256xf32> to vector<2x64xf32>
    %cst_95 = arith.constant 5.000000e-01 : f32
    %269 = vector.broadcast %cst_95 : f32 to vector<2x64xf32>
    %270 = arith.mulf %269, %268 : vector<2x64xf32>
    %271 = math.tanh %270 : vector<2x64xf32>
    %cst_96 = arith.constant 1.000000e+00 : f32
    %272 = vector.broadcast %cst_96 : f32 to vector<2x64xf32>
    %273 = arith.addf %271, %272 : vector<2x64xf32>
    %cst_97 = arith.constant 5.000000e-01 : f32
    %274 = vector.broadcast %cst_97 : f32 to vector<2x64xf32>
    %275 = arith.mulf %274, %273 : vector<2x64xf32>
    %276 = vector.extract_strided_slice %267 {offsets = [0, 64], sizes = [2, 64], strides = [1, 1]} : vector<2x256xf32> to vector<2x64xf32>
    %cst_98 = arith.constant 5.000000e-01 : f32
    %277 = vector.broadcast %cst_98 : f32 to vector<2x64xf32>
    %278 = arith.mulf %277, %276 : vector<2x64xf32>
    %279 = math.tanh %278 : vector<2x64xf32>
    %cst_99 = arith.constant 1.000000e+00 : f32
    %280 = vector.broadcast %cst_99 : f32 to vector<2x64xf32>
    %281 = arith.addf %279, %280 : vector<2x64xf32>
    %cst_100 = arith.constant 5.000000e-01 : f32
    %282 = vector.broadcast %cst_100 : f32 to vector<2x64xf32>
    %283 = arith.mulf %282, %281 : vector<2x64xf32>
    %284 = vector.extract_strided_slice %267 {offsets = [0, 128], sizes = [2, 64], strides = [1, 1]} : vector<2x256xf32> to vector<2x64xf32>
    %285 = math.tanh %284 : vector<2x64xf32>
    %286 = vector.extract_strided_slice %267 {offsets = [0, 192], sizes = [2, 64], strides = [1, 1]} : vector<2x256xf32> to vector<2x64xf32>
    %cst_101 = arith.constant 5.000000e-01 : f32
    %287 = vector.broadcast %cst_101 : f32 to vector<2x64xf32>
    %288 = arith.mulf %287, %286 : vector<2x64xf32>
    %289 = math.tanh %288 : vector<2x64xf32>
    %cst_102 = arith.constant 1.000000e+00 : f32
    %290 = vector.broadcast %cst_102 : f32 to vector<2x64xf32>
    %291 = arith.addf %289, %290 : vector<2x64xf32>
    %cst_103 = arith.constant 5.000000e-01 : f32
    %292 = vector.broadcast %cst_103 : f32 to vector<2x64xf32>
    %293 = arith.mulf %292, %291 : vector<2x64xf32>
    %294 = arith.mulf %283, %259 : vector<2x64xf32>
    %295 = arith.mulf %275, %285 : vector<2x64xf32>
    %296 = arith.addf %294, %295 : vector<2x64xf32>
    %297 = math.tanh %296 : vector<2x64xf32>
    %298 = arith.mulf %293, %297 : vector<2x64xf32>
    %c5 = arith.constant 5 : index
    %c0_104 = arith.constant 0 : index
    %c0_105 = arith.constant 0 : index
    %299 = vector.load %arg1[%c5, %c0_104, %c0_105] : memref<8x2x64xf32, #tpu.memory_space<vmem>>, vector<1x2x64xf32>
    %300 = vector.shape_cast %299 : vector<1x2x64xf32> to vector<2x64xf32>
    %301 = arith.mulf %300, %298 : vector<2x64xf32>
    %cst_106 = arith.constant 1.000000e+00 : f32
    %302 = vector.broadcast %cst_106 : f32 to vector<2x64xf32>
    %303 = arith.subf %302, %300 : vector<2x64xf32>
    %304 = arith.mulf %303, %254 : vector<2x64xf32>
    %305 = arith.addf %301, %304 : vector<2x64xf32>
    %306 = arith.mulf %300, %296 : vector<2x64xf32>
    %cst_107 = arith.constant 1.000000e+00 : f32
    %307 = vector.broadcast %cst_107 : f32 to vector<2x64xf32>
    %308 = arith.subf %307, %300 : vector<2x64xf32>
    %309 = arith.mulf %308, %259 : vector<2x64xf32>
    %310 = arith.addf %306, %309 : vector<2x64xf32>
    %311 = vector.extract_strided_slice %301 {offsets = [0, 0], sizes = [2, 32], strides = [1, 1]} : vector<2x64xf32> to vector<2x32xf32>
    %c10_108 = arith.constant 10 : index
    %c0_109 = arith.constant 0 : index
    %312 = vector.load %arg14[%c10_108, %c0_109] : memref<16x64xf32, #tpu.memory_space<vmem>>, vector<2x32xf32>
    tpu.vector_store %arg14[%c10_108, %c0_109], %311 {strides = array<i32>} : memref<16x64xf32, #tpu.memory_space<vmem>>, vector<2x32xf32>,
    %313 = vector.extract_strided_slice %301 {offsets = [0, 32], sizes = [2, 32], strides = [1, 1]} : vector<2x64xf32> to vector<2x32xf32>
    %c4_110 = arith.constant 4 : index
    %c32_111 = arith.constant 32 : index
    %314 = vector.load %arg14[%c4_110, %c32_111] : memref<16x64xf32, #tpu.memory_space<vmem>>, vector<2x32xf32>
    tpu.vector_store %arg14[%c4_110, %c32_111], %313 {strides = array<i32>} : memref<16x64xf32, #tpu.memory_space<vmem>>, vector<2x32xf32>,
    %315 = vector.extract_strided_slice %5 {offsets = [12, 0], sizes = [2, 256], strides = [1, 1]} : vector<16x256xf32> to vector<2x256xf32>
    %316 = arith.truncf %305 : vector<2x64xf32> to vector<2x64xbf16>
    %cst_112 = arith.constant dense<0.000000e+00> : vector<2x256xf32>
    %317 = tpu.matmul %316, %6, %cst_112 {dimension_numbers = #tpu.dot_dimension_numbers<[1], [0], [0], [1], [0, 0, 1, 1], [], []>} : vector<2x64xbf16>, vector<64x256xbf16>, vector<2x256xf32> -> vector<2x256xf32>
    %318 = arith.addf %315, %317 : vector<2x256xf32>
    %319 = vector.extract_strided_slice %318 {offsets = [0, 0], sizes = [2, 64], strides = [1, 1]} : vector<2x256xf32> to vector<2x64xf32>
    %cst_113 = arith.constant 5.000000e-01 : f32
    %320 = vector.broadcast %cst_113 : f32 to vector<2x64xf32>
    %321 = arith.mulf %320, %319 : vector<2x64xf32>
    %322 = math.tanh %321 : vector<2x64xf32>
    %cst_114 = arith.constant 1.000000e+00 : f32
    %323 = vector.broadcast %cst_114 : f32 to vector<2x64xf32>
    %324 = arith.addf %322, %323 : vector<2x64xf32>
    %cst_115 = arith.constant 5.000000e-01 : f32
    %325 = vector.broadcast %cst_115 : f32 to vector<2x64xf32>
    %326 = arith.mulf %325, %324 : vector<2x64xf32>
    %327 = vector.extract_strided_slice %318 {offsets = [0, 64], sizes = [2, 64], strides = [1, 1]} : vector<2x256xf32> to vector<2x64xf32>
    %cst_116 = arith.constant 5.000000e-01 : f32
    %328 = vector.broadcast %cst_116 : f32 to vector<2x64xf32>
    %329 = arith.mulf %328, %327 : vector<2x64xf32>
    %330 = math.tanh %329 : vector<2x64xf32>
    %cst_117 = arith.constant 1.000000e+00 : f32
    %331 = vector.broadcast %cst_117 : f32 to vector<2x64xf32>
    %332 = arith.addf %330, %331 : vector<2x64xf32>
    %cst_118 = arith.constant 5.000000e-01 : f32
    %333 = vector.broadcast %cst_118 : f32 to vector<2x64xf32>
    %334 = arith.mulf %333, %332 : vector<2x64xf32>
    %335 = vector.extract_strided_slice %318 {offsets = [0, 128], sizes = [2, 64], strides = [1, 1]} : vector<2x256xf32> to vector<2x64xf32>
    %336 = math.tanh %335 : vector<2x64xf32>
    %337 = vector.extract_strided_slice %318 {offsets = [0, 192], sizes = [2, 64], strides = [1, 1]} : vector<2x256xf32> to vector<2x64xf32>
    %cst_119 = arith.constant 5.000000e-01 : f32
    %338 = vector.broadcast %cst_119 : f32 to vector<2x64xf32>
    %339 = arith.mulf %338, %337 : vector<2x64xf32>
    %340 = math.tanh %339 : vector<2x64xf32>
    %cst_120 = arith.constant 1.000000e+00 : f32
    %341 = vector.broadcast %cst_120 : f32 to vector<2x64xf32>
    %342 = arith.addf %340, %341 : vector<2x64xf32>
    %cst_121 = arith.constant 5.000000e-01 : f32
    %343 = vector.broadcast %cst_121 : f32 to vector<2x64xf32>
    %344 = arith.mulf %343, %342 : vector<2x64xf32>
    %345 = arith.mulf %334, %310 : vector<2x64xf32>
    %346 = arith.mulf %326, %336 : vector<2x64xf32>
    %347 = arith.addf %345, %346 : vector<2x64xf32>
    %348 = math.tanh %347 : vector<2x64xf32>
    %349 = arith.mulf %344, %348 : vector<2x64xf32>
    %c6_122 = arith.constant 6 : index
    %c0_123 = arith.constant 0 : index
    %c0_124 = arith.constant 0 : index
    %350 = vector.load %arg1[%c6_122, %c0_123, %c0_124] : memref<8x2x64xf32, #tpu.memory_space<vmem>>, vector<1x2x64xf32>
    %351 = vector.shape_cast %350 : vector<1x2x64xf32> to vector<2x64xf32>
    %352 = arith.mulf %351, %349 : vector<2x64xf32>
    %cst_125 = arith.constant 1.000000e+00 : f32
    %353 = vector.broadcast %cst_125 : f32 to vector<2x64xf32>
    %354 = arith.subf %353, %351 : vector<2x64xf32>
    %355 = arith.mulf %354, %305 : vector<2x64xf32>
    %356 = arith.addf %352, %355 : vector<2x64xf32>
    %357 = arith.mulf %351, %347 : vector<2x64xf32>
    %cst_126 = arith.constant 1.000000e+00 : f32
    %358 = vector.broadcast %cst_126 : f32 to vector<2x64xf32>
    %359 = arith.subf %358, %351 : vector<2x64xf32>
    %360 = arith.mulf %359, %310 : vector<2x64xf32>
    %361 = arith.addf %357, %360 : vector<2x64xf32>
    %362 = vector.extract_strided_slice %352 {offsets = [0, 0], sizes = [2, 32], strides = [1, 1]} : vector<2x64xf32> to vector<2x32xf32>
    %c12_127 = arith.constant 12 : index
    %c0_128 = arith.constant 0 : index
    %363 = vector.load %arg14[%c12_127, %c0_128] : memref<16x64xf32, #tpu.memory_space<vmem>>, vector<2x32xf32>
    tpu.vector_store %arg14[%c12_127, %c0_128], %362 {strides = array<i32>} : memref<16x64xf32, #tpu.memory_space<vmem>>, vector<2x32xf32>,
    %364 = vector.extract_strided_slice %352 {offsets = [0, 32], sizes = [2, 32], strides = [1, 1]} : vector<2x64xf32> to vector<2x32xf32>
    %c2_129 = arith.constant 2 : index
    %c32_130 = arith.constant 32 : index
    %365 = vector.load %arg14[%c2_129, %c32_130] : memref<16x64xf32, #tpu.memory_space<vmem>>, vector<2x32xf32>
    tpu.vector_store %arg14[%c2_129, %c32_130], %364 {strides = array<i32>} : memref<16x64xf32, #tpu.memory_space<vmem>>, vector<2x32xf32>,
    %366 = vector.extract_strided_slice %5 {offsets = [14, 0], sizes = [2, 256], strides = [1, 1]} : vector<16x256xf32> to vector<2x256xf32>
    %367 = arith.truncf %356 : vector<2x64xf32> to vector<2x64xbf16>
    %cst_131 = arith.constant dense<0.000000e+00> : vector<2x256xf32>
    %368 = tpu.matmul %367, %6, %cst_131 {dimension_numbers = #tpu.dot_dimension_numbers<[1], [0], [0], [1], [0, 0, 1, 1], [], []>} : vector<2x64xbf16>, vector<64x256xbf16>, vector<2x256xf32> -> vector<2x256xf32>
    %369 = arith.addf %366, %368 : vector<2x256xf32>
    %370 = vector.extract_strided_slice %369 {offsets = [0, 0], sizes = [2, 64], strides = [1, 1]} : vector<2x256xf32> to vector<2x64xf32>
    %cst_132 = arith.constant 5.000000e-01 : f32
    %371 = vector.broadcast %cst_132 : f32 to vector<2x64xf32>
    %372 = arith.mulf %371, %370 : vector<2x64xf32>
    %373 = math.tanh %372 : vector<2x64xf32>
    %cst_133 = arith.constant 1.000000e+00 : f32
    %374 = vector.broadcast %cst_133 : f32 to vector<2x64xf32>
    %375 = arith.addf %373, %374 : vector<2x64xf32>
    %cst_134 = arith.constant 5.000000e-01 : f32
    %376 = vector.broadcast %cst_134 : f32 to vector<2x64xf32>
    %377 = arith.mulf %376, %375 : vector<2x64xf32>
    %378 = vector.extract_strided_slice %369 {offsets = [0, 64], sizes = [2, 64], strides = [1, 1]} : vector<2x256xf32> to vector<2x64xf32>
    %cst_135 = arith.constant 5.000000e-01 : f32
    %379 = vector.broadcast %cst_135 : f32 to vector<2x64xf32>
    %380 = arith.mulf %379, %378 : vector<2x64xf32>
    %381 = math.tanh %380 : vector<2x64xf32>
    %cst_136 = arith.constant 1.000000e+00 : f32
    %382 = vector.broadcast %cst_136 : f32 to vector<2x64xf32>
    %383 = arith.addf %381, %382 : vector<2x64xf32>
    %cst_137 = arith.constant 5.000000e-01 : f32
    %384 = vector.broadcast %cst_137 : f32 to vector<2x64xf32>
    %385 = arith.mulf %384, %383 : vector<2x64xf32>
    %386 = vector.extract_strided_slice %369 {offsets = [0, 128], sizes = [2, 64], strides = [1, 1]} : vector<2x256xf32> to vector<2x64xf32>
    %387 = math.tanh %386 : vector<2x64xf32>
    %388 = vector.extract_strided_slice %369 {offsets = [0, 192], sizes = [2, 64], strides = [1, 1]} : vector<2x256xf32> to vector<2x64xf32>
    %cst_138 = arith.constant 5.000000e-01 : f32
    %389 = vector.broadcast %cst_138 : f32 to vector<2x64xf32>
    %390 = arith.mulf %389, %388 : vector<2x64xf32>
    %391 = math.tanh %390 : vector<2x64xf32>
    %cst_139 = arith.constant 1.000000e+00 : f32
    %392 = vector.broadcast %cst_139 : f32 to vector<2x64xf32>
    %393 = arith.addf %391, %392 : vector<2x64xf32>
    %cst_140 = arith.constant 5.000000e-01 : f32
    %394 = vector.broadcast %cst_140 : f32 to vector<2x64xf32>
    %395 = arith.mulf %394, %393 : vector<2x64xf32>
    %396 = arith.mulf %385, %361 : vector<2x64xf32>
    %397 = arith.mulf %377, %387 : vector<2x64xf32>
    %398 = arith.addf %396, %397 : vector<2x64xf32>
    %399 = math.tanh %398 : vector<2x64xf32>
    %400 = arith.mulf %395, %399 : vector<2x64xf32>
    %c7 = arith.constant 7 : index
    %c0_141 = arith.constant 0 : index
    %c0_142 = arith.constant 0 : index
    %401 = vector.load %arg1[%c7, %c0_141, %c0_142] : memref<8x2x64xf32, #tpu.memory_space<vmem>>, vector<1x2x64xf32>
    %402 = vector.shape_cast %401 : vector<1x2x64xf32> to vector<2x64xf32>
    %403 = arith.mulf %402, %400 : vector<2x64xf32>
    %404 = vector.extract_strided_slice %403 {offsets = [0, 0], sizes = [2, 32], strides = [1, 1]} : vector<2x64xf32> to vector<2x32xf32>
    %c14_143 = arith.constant 14 : index
    %c0_144 = arith.constant 0 : index
    %405 = vector.load %arg14[%c14_143, %c0_144] : memref<16x64xf32, #tpu.memory_space<vmem>>, vector<2x32xf32>
    tpu.vector_store %arg14[%c14_143, %c0_144], %404 {strides = array<i32>} : memref<16x64xf32, #tpu.memory_space<vmem>>, vector<2x32xf32>,
    %406 = vector.extract_strided_slice %403 {offsets = [0, 32], sizes = [2, 32], strides = [1, 1]} : vector<2x64xf32> to vector<2x32xf32>
    %c0_145 = arith.constant 0 : index
    %c32_146 = arith.constant 32 : index
    %407 = vector.load %arg14[%c0_145, %c32_146] : memref<16x64xf32, #tpu.memory_space<vmem>>, vector<2x32xf32>
    tpu.vector_store %arg14[%c0_145, %c32_146], %406 {strides = array<i32>} : memref<16x64xf32, #tpu.memory_space<vmem>>, vector<2x32xf32>,
    %c0_147 = arith.constant 0 : index
    %c0_148 = arith.constant 0 : index
    %408 = vector.load %arg5[%c0_147, %c0_148] : memref<16x16xf32, #tpu.memory_space<vmem>>, vector<16x16xf32>
    %c0_149 = arith.constant 0 : index
    %c0_150 = arith.constant 0 : index
    %409 = vector.load %arg14[%c0_149, %c0_150] : memref<16x64xf32, #tpu.memory_space<vmem>>, vector<16x64xf32>
    %cst_151 = arith.constant dense<0.000000e+00> : vector<16x64xf32>
    %410 = tpu.matmul %408, %409, %cst_151 {dimension_numbers = #tpu.dot_dimension_numbers<[1], [0], [0], [1], [0, 0, 1, 1], [], []>} : vector<16x16xf32>, vector<16x64xf32>, vector<16x64xf32> -> vector<16x64xf32>
    %c0_152 = arith.constant 0 : index
    %c0_153 = arith.constant 0 : index
    %411 = vector.load %arg2[%c0_152, %c0_153] : memref<16x64xf32, #tpu.memory_space<vmem>>, vector<16x64xf32>
    %412 = arith.mulf %411, %410 : vector<16x64xf32>
    %413 = arith.truncf %412 : vector<16x64xf32> to vector<16x64xbf16>
    %c0_154 = arith.constant 0 : index
    %c0_155 = arith.constant 0 : index
    %414 = vector.load %arg9[%c0_154, %c0_155] : memref<64x64xbf16, #tpu.memory_space<vmem>>, vector<64x64xbf16>
    %cst_156 = arith.constant dense<0.000000e+00> : vector<16x64xf32>
    %415 = tpu.matmul %413, %414, %cst_156 {dimension_numbers = #tpu.dot_dimension_numbers<[1], [0], [0], [1], [0, 0, 1, 1], [], []>} : vector<16x64xbf16>, vector<64x64xbf16>, vector<16x64xf32> -> vector<16x64xf32>
    %c0_157 = arith.constant 0 : index
    %c0_158 = arith.constant 0 : index
    %416 = vector.load %arg4[%c0_157, %c0_158] : memref<16x16xf32, #tpu.memory_space<vmem>>, vector<16x16xf32>
    %cst_159 = arith.constant dense<0.000000e+00> : vector<16x64xf32>
    %417 = tpu.matmul %416, %415, %cst_159 {dimension_numbers = #tpu.dot_dimension_numbers<[1], [0], [0], [1], [0, 0, 1, 1], [], []>} : vector<16x16xf32>, vector<16x64xf32>, vector<16x64xf32> -> vector<16x64xf32>
    %c0_160 = arith.constant 0 : index
    %c0_161 = arith.constant 0 : index
    %418 = vector.load %arg10[%c0_160, %c0_161] : memref<1x64xf32, #tpu.memory_space<vmem>>, vector<1x64xf32>
    %419 = vector.broadcast %418 : vector<1x64xf32> to vector<16x64xf32>
    %420 = arith.addf %417, %419 : vector<16x64xf32>
    %c0_162 = arith.constant 0 : index
    %c0_163 = arith.constant 0 : index
    %421 = vector.load %arg3[%c0_162, %c0_163] : memref<16x64xf32, #tpu.memory_space<vmem>>, vector<16x64xf32>
    %cst_164 = arith.constant 0.000000e+00 : f32
    %422 = vector.broadcast %cst_164 : f32 to vector<16x64xf32>
    %423 = arith.maximumf %420, %422 : vector<16x64xf32>
    %424 = arith.mulf %421, %423 : vector<16x64xf32>
    %425 = vector.extract_strided_slice %410 {offsets = [0, 0], sizes = [8, 64], strides = [1, 1]} : vector<16x64xf32> to vector<8x64xf32>
    %426 = vector.extract_strided_slice %424 {offsets = [0, 0], sizes = [8, 64], strides = [1, 1]} : vector<16x64xf32> to vector<8x64xf32>
    %cst_165 = arith.constant dense<0.000000e+00> : vector<64xf32>
    %427 = vector.multi_reduction <add>, %426, %cst_165 [0] : vector<8x64xf32> to vector<64xf32>
    %428 = vector.shape_cast %427 : vector<64xf32> to vector<1x64xf32>
    %cst_166 = arith.constant dense<0.000000e+00> : vector<1x8xf32>
    %429 = tpu.matmul %428, %425, %cst_166 {dimension_numbers = #tpu.dot_dimension_numbers<[1], [1], [0], [0], [0, 0, 1, 0], [], []>} : vector<1x64xf32>, vector<8x64xf32>, vector<1x8xf32> -> vector<1x8xf32>
    %cst_167 = arith.constant dense<0xFF800000> : vector<1xf32>
    %430 = vector.multi_reduction <maximumf>, %429, %cst_167 [1] : vector<1x8xf32> to vector<1xf32>
    %431 = vector.shape_cast %430 : vector<1xf32> to vector<1x1xf32>
    %432 = vector.broadcast %431 : vector<1x1xf32> to vector<1x8xf32>
    %433 = arith.subf %429, %432 : vector<1x8xf32>
    %434 = math.exp %433 : vector<1x8xf32>
    %cst_168 = arith.constant dense<0.000000e+00> : vector<1xf32>
    %435 = vector.multi_reduction <add>, %434, %cst_168 [1] : vector<1x8xf32> to vector<1xf32>
    %436 = vector.shape_cast %435 : vector<1xf32> to vector<1x1xf32>
    %437 = vector.broadcast %436 : vector<1x1xf32> to vector<1x8xf32>
    %438 = arith.divf %434, %437 : vector<1x8xf32>
    %cst_169 = arith.constant dense<0.000000e+00> : vector<1x64xf32>
    %439 = tpu.matmul %438, %425, %cst_169 {dimension_numbers = #tpu.dot_dimension_numbers<[1], [0], [0], [1], [0, 0, 1, 1], [], []>} : vector<1x8xf32>, vector<8x64xf32>, vector<1x64xf32> -> vector<1x64xf32>
    %440 = vector.extract_strided_slice %410 {offsets = [8, 0], sizes = [8, 64], strides = [1, 1]} : vector<16x64xf32> to vector<8x64xf32>
    %441 = vector.extract_strided_slice %424 {offsets = [8, 0], sizes = [8, 64], strides = [1, 1]} : vector<16x64xf32> to vector<8x64xf32>
    %cst_170 = arith.constant dense<0.000000e+00> : vector<64xf32>
    %442 = vector.multi_reduction <add>, %441, %cst_170 [0] : vector<8x64xf32> to vector<64xf32>
    %443 = vector.shape_cast %442 : vector<64xf32> to vector<1x64xf32>
    %cst_171 = arith.constant dense<0.000000e+00> : vector<1x8xf32>
    %444 = tpu.matmul %443, %440, %cst_171 {dimension_numbers = #tpu.dot_dimension_numbers<[1], [1], [0], [0], [0, 0, 1, 0], [], []>} : vector<1x64xf32>, vector<8x64xf32>, vector<1x8xf32> -> vector<1x8xf32>
    %cst_172 = arith.constant dense<0xFF800000> : vector<1xf32>
    %445 = vector.multi_reduction <maximumf>, %444, %cst_172 [1] : vector<1x8xf32> to vector<1xf32>
    %446 = vector.shape_cast %445 : vector<1xf32> to vector<1x1xf32>
    %447 = vector.broadcast %446 : vector<1x1xf32> to vector<1x8xf32>
    %448 = arith.subf %444, %447 : vector<1x8xf32>
    %449 = math.exp %448 : vector<1x8xf32>
    %cst_173 = arith.constant dense<0.000000e+00> : vector<1xf32>
    %450 = vector.multi_reduction <add>, %449, %cst_173 [1] : vector<1x8xf32> to vector<1xf32>
    %451 = vector.shape_cast %450 : vector<1xf32> to vector<1x1xf32>
    %452 = vector.broadcast %451 : vector<1x1xf32> to vector<1x8xf32>
    %453 = arith.divf %449, %452 : vector<1x8xf32>
    %cst_174 = arith.constant dense<0.000000e+00> : vector<1x64xf32>
    %454 = tpu.matmul %453, %440, %cst_174 {dimension_numbers = #tpu.dot_dimension_numbers<[1], [0], [0], [1], [0, 0, 1, 1], [], []>} : vector<1x8xf32>, vector<8x64xf32>, vector<1x64xf32> -> vector<1x64xf32>
    %455 = tpu.concatenate %439, %454 in 0 : vector<1x64xf32>, vector<1x64xf32> -> vector<2x64xf32>
    %c0_175 = arith.constant 0 : index
    %c0_176 = arith.constant 0 : index
    %456 = vector.load %arg11[%c0_175, %c0_176] : memref<64x128xf32, #tpu.memory_space<vmem>>, vector<64x128xf32>
    %cst_177 = arith.constant dense<0.000000e+00> : vector<2x128xf32>
    %457 = tpu.matmul %455, %456, %cst_177 {dimension_numbers = #tpu.dot_dimension_numbers<[1], [0], [0], [1], [0, 0, 1, 1], [], []>} : vector<2x64xf32>, vector<64x128xf32>, vector<2x128xf32> -> vector<2x128xf32>
    %c0_178 = arith.constant 0 : index
    %c0_179 = arith.constant 0 : index
    %458 = vector.load %arg12[%c0_178, %c0_179] : memref<1x128xf32, #tpu.memory_space<vmem>>, vector<1x128xf32>
    %459 = vector.broadcast %458 : vector<1x128xf32> to vector<2x128xf32>
    %460 = arith.addf %457, %459 : vector<2x128xf32>
    %c0_180 = arith.constant 0 : index
    %c0_181 = arith.constant 0 : index
    %461 = vector.load %arg13[%c0_180, %c0_181] : memref<2x128xf32, #tpu.memory_space<vmem>>, vector<2x128xf32>
    tpu.vector_store %arg13[%c0_180, %c0_181], %460 {strides = array<i32>} : memref<2x128xf32, #tpu.memory_space<vmem>>, vector<2x128xf32>,
    return
  }
}

</mosaic_0001>

<bundles_post_ra>
// kernel: tpu_custom_call.1
= control target key start
LH: loop header
LB: loop body
LE: loop exit
PB: predicated region body
PF: predicated region fallthrough
CT: control target
= control target key end

     0   :  { %18 = vsyncpa [#allocation4], 0  ;;  %s2758_s0 = inlined_call_operand.hbm [shape: bf16[16,64], index: 0, kind: input, shape index: {}]   ;;  %s2759_s1 = inlined_call_operand.hbm [shape: f32[8,2,64], index: 1, kind: input, shape index: {}]   ;;  %s2760_s2 = inlined_call_operand.hbm [shape: f32[16,64], index: 2, kind: input, shape index: {}]   ;;  %s2761_s3 = inlined_call_operand.hbm [shape: f32[16,64], index: 3, kind: input, shape index: {}]   ;;  %s2762_s4 = inlined_call_operand.hbm [shape: f32[16,16], index: 4, kind: input, shape index: {}]   ;;  %s2763_s5 = inlined_call_operand.hbm [shape: f32[16,16], index: 5, kind: input, shape index: {}]   ;;  %s2764_s6 = inlined_call_operand.hbm [shape: bf16[64,256], index: 6, kind: input, shape index: {}]   ;;  %s2765_s7 = inlined_call_operand.hbm [shape: bf16[64,256], index: 7, kind: input, shape index: {}]   ;;  %s2766_s8 = inlined_call_operand.vmem [shape: f32[1,256], index: 8, kind: input, shape index: {}]   ;;  %s2767_s9 = inlined_call_operand.vmem [shape: bf16[64,64], index: 9, kind: input, shape index: {}]   ;;  %s2768_s10 = inlined_call_operand.vmem [shape: f32[1,64], index: 10, kind: input, shape index: {}]   ;;  %s2769_s11 = inlined_call_operand.hbm [shape: f32[64,128], index: 11, kind: input, shape index: {}]   ;;  %s2770_s12 = inlined_call_operand.vmem [shape: f32[1,128], index: 12, kind: input, shape index: {}]   ;;  %s2771_s13 = inlined_call_operand.hbm [shape: f32[2,128], index: 13, kind: output, shape index: {}]  }
   0x1   :  { %19 = vsyncpa [#allocation7], 0 }
   0x2   :  { %20 = vsyncpa [#allocation10], 0 }
   0x3   :  { %21 = vsyncpa [#allocation13], 0 }
   0x4   :  { %22 = vsyncpa [#allocation16], 0 }
   0x5   :  { %23 = vsyncpa [#allocation5], 0  ;;  %s2295_s25 = smov [#allocation6]   ;;  %s2063_s29 = scalar_lea.hbm %s2759_s1, 256 }
   0x6   :  { %s41_s26 = sshll.u32 %s2295_s25, 4  ;;  %p2064_p0 = scmp.ne.s32.totalorder %s2759_s1, %s2063_s29  ;;  %s42_s26 = int_to_ptr.vmem [resolvable:$true] %s41_s26 }
   0x7   :  { %p2067_p1 = scmp.lt.u32.totalorder %s2063_s29, %s2759_s1 }
   0x9   :  { %p2069_p2 = pnand %p2067_p1, %p2064_p0 }
   0xb   :  { %2072 = shalt.err (!%p2069_p2)
}
   0xc   :  { %s2073_s17 = scalar_lea.vmem %s42_s26, 256  ;;  %p2078_p4 = scmp.lt.s32.totalorder %s42_s26, %s42_s26 }
   0xd   :  { %p2074_p3 = scmp.ne.s32.totalorder %s42_s26, %s2073_s17  ;;  %p2079_p5 = scmp.lt.s32.totalorder %s2073_s17, %s2073_s17 }
   0xf   :  { %p2080_p6 = por %p2079_p5, %p2078_p4 }
  0x11   :  { %p2081_p7 = pnand %p2080_p6, %p2074_p3 }
  0x13   :  { %2084 = shalt.err (!%p2081_p7)
}
  0x14   :  { %s2296_s18 = smov 32   ;;  %s2297_s19 = smov 2  }
  0x15   :  { %47 = dma.hbm_to_vmem [thread:$0]  %s2759_s1, 256, %s42_s26, [#allocation7], %s2296_s18, %s2296_s18, %s2297_s19  }
  0x16   :  { %s2298_s22 = smov [#allocation9]   ;;  %s2299_s24 = smov [#allocation12]  }
  0x17   :  { %s65_s23 = sshll.u32 %s2298_s22, 4  ;;  %s89_s25 = sshll.u32 %s2299_s24, 4  ;;  %s66_s23 = int_to_ptr.vmem [resolvable:$true] %s65_s23  ;;  %s90_s25 = int_to_ptr.vmem [resolvable:$true] %s89_s25 }
  0x18   :  { %s2085_s29 = scalar_lea.hbm %s2761_s3, 256 }
  0x19   :  { %p2086_p8 = scmp.ne.s32.totalorder %s2761_s3, %s2085_s29  ;;  %p2089_p9 = scmp.lt.u32.totalorder %s2085_s29, %s2761_s3 }
  0x1b   :  { %p2091_p10 = pnand %p2089_p9, %p2086_p8 }
  0x1d   :  { %2094 = shalt.err (!%p2091_p10)
}
  0x1e   :  { %s2095_s1 = scalar_lea.vmem %s66_s23, 256  ;;  %p2100_p12 = scmp.lt.s32.totalorder %s66_s23, %s66_s23 }
  0x1f   :  { %p2096_p11 = scmp.ne.s32.totalorder %s66_s23, %s2095_s1  ;;  %p2101_p13 = scmp.lt.s32.totalorder %s2095_s1, %s2095_s1 }
  0x21   :  { %p2102_p0 = por %p2101_p13, %p2100_p12 }
  0x23   :  { %p2103_p1 = pnand %p2102_p0, %p2096_p11 }
  0x25   :  { %2106 = shalt.err (!%p2103_p1)
}
  0x26   :  { %s2300_s26 = smov 128   ;;  %s2301_s17 = smov 8  }
  0x27   :  { %71 = dma.hbm_to_vmem [thread:$0]  %s2761_s3, 256, %s66_s23, [#allocation10], %s2300_s26, %s2300_s26, %s2301_s17  }
  0x28   :  { %s2107_s22 = scalar_lea.hbm %s2763_s5, 256 }
  0x29   :  { %p2108_p2 = scmp.ne.s32.totalorder %s2763_s5, %s2107_s22  ;;  %p2111_p3 = scmp.lt.u32.totalorder %s2107_s22, %s2763_s5 }
  0x2b   :  { %p2113_p4 = pnand %p2111_p3, %p2108_p2 }
  0x2d   :  { %2116 = shalt.err (!%p2113_p4)
}
  0x2e   :  { %s2117_s30 = scalar_lea.vmem %s90_s25, 256  ;;  %p2122_p6 = scmp.lt.s32.totalorder %s90_s25, %s90_s25 }
  0x2f   :  { %p2118_p5 = scmp.ne.s32.totalorder %s90_s25, %s2117_s30  ;;  %p2123_p7 = scmp.lt.s32.totalorder %s2117_s30, %s2117_s30 }
  0x31   :  { %p2124_p8 = por %p2123_p7, %p2122_p6 }
  0x33   :  { %p2125_p9 = pnand %p2124_p8, %p2118_p5 }
  0x35   :  { %2128 = shalt.err (!%p2125_p9)
}
  0x36   :  { %95 = dma.hbm_to_vmem [thread:$0]  %s2763_s5, 256, %s90_s25, [#allocation13], %s2300_s26, %s2300_s26, %s2301_s17  }
  0x37   :  { %s2302_s14 = smov [#allocation15]   ;;  %s2303_s16 = smov [#allocation3]  }
  0x38   :  { %s113_s15 = sshll.u32 %s2302_s14, 4  ;;  %s29_s1 = sshll.u32 %s2303_s16, 4  ;;  %s114_s15 = int_to_ptr.vmem [resolvable:$true] %s113_s15  ;;  %s30_s1 = int_to_ptr.vmem [resolvable:$true] %s29_s1 }
  0x39   :  { %s2129_s20 = scalar_lea.hbm %s2765_s7, 1024 }
  0x3a   :  { %p2130_p10 = scmp.ne.s32.totalorder %s2765_s7, %s2129_s20  ;;  %p2133_p11 = scmp.lt.u32.totalorder %s2129_s20, %s2765_s7 }
  0x3c   :  { %p2135_p12 = pnand %p2133_p11, %p2130_p10 }
  0x3e   :  { %2138 = shalt.err (!%p2135_p12)
}
  0x3f   :  { %s2139_s5 = scalar_lea.vmem %s114_s15, 1024  ;;  %p2144_p0 = scmp.lt.s32.totalorder %s114_s15, %s114_s15 }
  0x40   :  { %p2140_p13 = scmp.ne.s32.totalorder %s114_s15, %s2139_s5  ;;  %p2145_p1 = scmp.lt.s32.totalorder %s2139_s5, %s2139_s5 }
  0x42   :  { %p2146_p2 = por %p2145_p1, %p2144_p0 }
  0x44   :  { %p2147_p3 = pnand %p2146_p2, %p2140_p13 }
  0x46   :  { %2150 = shalt.err (!%p2147_p3)
}
  0x47   :  { %119 = dma.hbm_to_vmem [thread:$0]  %s2765_s7, 1024, %s114_s15, [#allocation16], %s2300_s26, %s2300_s26, %s2301_s17  }
  0x48   :  { %s2151_s3 = scalar_lea.hbm %s2758_s0, 128 }
  0x49   :  { %p2152_p4 = scmp.ne.s32.totalorder %s2758_s0, %s2151_s3  ;;  %p2155_p5 = scmp.lt.u32.totalorder %s2151_s3, %s2758_s0 }
  0x4b   :  { %p2157_p6 = pnand %p2155_p5, %p2152_p4 }
  0x4d   :  { %2160 = shalt.err (!%p2157_p6)
}
  0x4e   :  { %s2161_s19 = scalar_lea.vmem %s30_s1, 128  ;;  %p2166_p8 = scmp.lt.s32.totalorder %s30_s1, %s30_s1 }
  0x4f   :  { %p2162_p7 = scmp.ne.s32.totalorder %s30_s1, %s2161_s19  ;;  %p2167_p9 = scmp.lt.s32.totalorder %s2161_s19, %s2161_s19 }
  0x51   :  { %p2168_p10 = por %p2167_p9, %p2166_p8 }
  0x53   :  { %p2169_p11 = pnand %p2168_p10, %p2162_p7 }
  0x55   :  { %2172 = shalt.err (!%p2169_p11)
}
  0x56   :  { %s2304_s7 = smov 64   ;;  %s2305_s15 = smov 4  }
  0x57   :  { %35 = dma.hbm_to_vmem [thread:$0]  %s2758_s0, 128, %s30_s1, [#allocation4], %s2304_s7, %s2304_s7, %s2305_s15  }
  0x58   :  { %s2306_s22 = smov [#allocation8]   ;;  %s2307_s27 = smov [#allocation11]  }
  0x59   :  { %s53_s24 = sshll.u32 %s2306_s22, 4  ;;  %s77_s5 = sshll.u32 %s2307_s27, 4  ;;  %s54_s24 = int_to_ptr.vmem [resolvable:$true] %s53_s24  ;;  %s78_s5 = int_to_ptr.vmem [resolvable:$true] %s77_s5 }
  0x5a   :  { %s2173_s29 = scalar_lea.hbm %s2760_s2, 256 }
  0x5b   :  { %p2174_p12 = scmp.ne.s32.totalorder %s2760_s2, %s2173_s29  ;;  %p2177_p13 = scmp.lt.u32.totalorder %s2173_s29, %s2760_s2 }
  0x5d   :  { %p2179_p0 = pnand %p2177_p13, %p2174_p12 }
  0x5f   :  { %2182 = shalt.err (!%p2179_p0)
}
  0x60   :  { %s2183_s0 = scalar_lea.vmem %s54_s24, 256  ;;  %p2188_p2 = scmp.lt.s32.totalorder %s54_s24, %s54_s24 }
  0x61   :  { %p2184_p1 = scmp.ne.s32.totalorder %s54_s24, %s2183_s0  ;;  %p2189_p3 = scmp.lt.s32.totalorder %s2183_s0, %s2183_s0 }
  0x63   :  { %p2190_p4 = por %p2189_p3, %p2188_p2 }
  0x65   :  { %p2191_p5 = pnand %p2190_p4, %p2184_p1 }
  0x67   :  { %2194 = shalt.err (!%p2191_p5)
}
  0x68   :  { %59 = dma.hbm_to_vmem [thread:$0]  %s2760_s2, 256, %s54_s24, [#allocation7], %s2300_s26, %s2300_s26, %s2301_s17  }
  0x69   :  { %s2195_s15 = scalar_lea.hbm %s2762_s4, 256 }
  0x6a   :  { %p2196_p6 = scmp.ne.s32.totalorder %s2762_s4, %s2195_s15  ;;  %p2199_p7 = scmp.lt.u32.totalorder %s2195_s15, %s2762_s4 }
  0x6c   :  { %p2201_p8 = pnand %p2199_p7, %p2196_p6 }
  0x6e   :  { %2204 = shalt.err (!%p2201_p8)
}
  0x6f   :  { %s2205_s25 = scalar_lea.vmem %s78_s5, 256  ;;  %p2210_p10 = scmp.lt.s32.totalorder %s78_s5, %s78_s5 }
  0x70   :  { %p2206_p9 = scmp.ne.s32.totalorder %s78_s5, %s2205_s25  ;;  %p2211_p11 = scmp.lt.s32.totalorder %s2205_s25, %s2205_s25 }
  0x72   :  { %p2212_p12 = por %p2211_p11, %p2210_p10 }
  0x74   :  { %p2213_p13 = pnand %p2212_p12, %p2206_p9 }
  0x76   :  { %2216 = shalt.err (!%p2213_p13)
}
  0x77   :  { %83 = dma.hbm_to_vmem [thread:$0]  %s2762_s4, 256, %s78_s5, [#allocation10], %s2300_s26, %s2300_s26, %s2301_s17  }
  0x78   :  { %s2308_s28 = smov [#allocation14]   ;;  %s2309_s30 = smov [#allocation17]  }
  0x79   :  { %s101_s29 = sshll.u32 %s2308_s28, 4  ;;  %s131_s3 = sshll.u32 %s2309_s30, 4  ;;  %s102_s29 = int_to_ptr.vmem [resolvable:$true] %s101_s29  ;;  %s132_s3 = int_to_ptr.vmem [resolvable:$true] %s131_s3 }
  0x7a   :  { %s2217_s0 = scalar_lea.hbm %s2764_s6, 1024 }
  0x7b   :  { %p2218_p0 = scmp.ne.s32.totalorder %s2764_s6, %s2217_s0  ;;  %p2221_p1 = scmp.lt.u32.totalorder %s2217_s0, %s2764_s6 }
  0x7d   :  { %p2223_p2 = pnand %p2221_p1, %p2218_p0 }
  0x7f   :  { %2226 = shalt.err (!%p2223_p2)
}
  0x80   :  { %s2227_s4 = scalar_lea.vmem %s102_s29, 1024  ;;  %p2232_p4 = scmp.lt.s32.totalorder %s102_s29, %s102_s29 }
  0x81   :  { %p2228_p3 = scmp.ne.s32.totalorder %s102_s29, %s2227_s4  ;;  %p2233_p5 = scmp.lt.s32.totalorder %s2227_s4, %s2227_s4 }
  0x83   :  { %p2234_p6 = por %p2233_p5, %p2232_p4 }
  0x85   :  { %p2235_p7 = pnand %p2234_p6, %p2228_p3 }
  0x87   :  { %2238 = shalt.err (!%p2235_p7)
}
  0x88   :  { %107 = dma.hbm_to_vmem [thread:$0]  %s2764_s6, 1024, %s102_s29, [#allocation13], %s2300_s26, %s2300_s26, %s2301_s17  }
  0x89   :  { %s2239_s22 = scalar_lea.hbm %s2769_s11, 1024 }
  0x8a   :  { %p2240_p8 = scmp.ne.s32.totalorder %s2769_s11, %s2239_s22  ;;  %p2243_p9 = scmp.lt.u32.totalorder %s2239_s22, %s2769_s11 }
  0x8c   :  { %p2245_p10 = pnand %p2243_p9, %p2240_p8 }
  0x8e   :  { %2248 = shalt.err (!%p2245_p10)
}
  0x8f   :  { %s2249_s28 = scalar_lea.vmem %s132_s3, 1024  ;;  %p2254_p12 = scmp.lt.s32.totalorder %s132_s3, %s132_s3 }
  0x90   :  { %p2250_p11 = scmp.ne.s32.totalorder %s132_s3, %s2249_s28  ;;  %p2255_p13 = scmp.lt.s32.totalorder %s2249_s28, %s2249_s28 }
  0x92   :  { %p2256_p0 = por %p2255_p13, %p2254_p12 }
  0x94   :  { %p2257_p1 = pnand %p2256_p0, %p2250_p11 }
  0x96   :  { %2260 = shalt.err (!%p2257_p1)
}
  0x97   :  { %137 = dma.hbm_to_vmem [thread:$0]  %s2769_s11, 1024, %s132_s3, [#allocation16], %s2300_s26, %s2300_s26, %s2301_s17  }
  0x98   :  { %2283 = dma.done.wait [#allocation4], 128  }
  0x99   :  { %2284 = vsyncadd [#allocation4], 4294967168 }
  0x9a   :  { %2285 = dma.done.wait [#allocation7], 512  }
  0x9b   :  { %2286 = vsyncadd [#allocation7], 4294966784 }
  0x9c   :  { %2287 = dma.done.wait [#allocation10], 512  }
  0x9d   :  { %2288 = vsyncadd [#allocation10], 4294966784 }
  0x9e   :  { %2289 = dma.done.wait [#allocation13], 1280  }
  0x9f   :  { %2290 = vsyncadd [#allocation13], 4294966016 }
  0xa0   :  { %2291 = dma.done.wait [#allocation16], 2048  }
  0xa1   :  { %2292 = vsyncadd [#allocation16], 4294965248  ;;  %v2310_v0 = vmov 0   ;;  %v1962_v1 = vld [vmem:[#allocation14 + $0x4] ss:$8 sps:$4 sm:$0xff]   ;;  %vm235_vm0 = vcmask 523264   ;;  %v180_v18 = vlaneseq }
  0xa2   :  { %271 = vmatprep.mubr.bf16.mxu0 %v2310_v0  ;;  %365 = vmatprep.mubr.bf16.mxu1 %v2310_v0  ;;  %v2518_v2 = vld [vmem:[#allocation15 + $0x4] ss:$8 sps:$4 sm:$0xff]   ;;  %v1966_v3 = vld [vmem:[#allocation14] ss:$8 sps:$4 sm:$0xff]   ;;  %v1968_v5 = vld [vmem:[#allocation14 + $0x14] ss:$8 sps:$4 sm:$0xff]  }
  0xa3   :  { %239 = vmatprep.subr.bf16.mxu0 %v1962_v1  ;;  %v2520_v4 = vld [vmem:[#allocation15] ss:$8 sps:$4 sm:$0xff]   ;;  %333 = vmatprep.subr.bf16.mxu1 %v2518_v2  ;;  %v2524_v6 = vld [vmem:[#allocation15 + $0x14] ss:$8 sps:$4 sm:$0xff]   ;;  %v1972_v7 = vld [vmem:[#allocation14 + $0x10] ss:$8 sps:$4 sm:$0xff]  }
  0xa4   :  { %240 = vmatpush1.bf16.msra.mxu0 %v1966_v3  ;;  %334 = vmatpush1.bf16.msra.mxu1 %v2520_v4  ;;  %v2526_v8 = vld [vmem:[#allocation15 + $0x10] ss:$8 sps:$4 sm:$0xff]   ;;  %v1974_v9 = vld [vmem:[#allocation14 + $0x24] ss:$8 sps:$4 sm:$0xff]   ;;  %v1978_v11 = vld [vmem:[#allocation14 + $0x20] ss:$8 sps:$4 sm:$0xff]  }
  0xa5   :  { %241 = vmatprep.subr.bf16.mxu0 %v1968_v5  ;;  %335 = vmatprep.subr.bf16.mxu1 %v2524_v6  ;;  %v2529_v10 = vld [vmem:[#allocation15 + $0x24] ss:$8 sps:$4 sm:$0xff]   ;;  %v2531_v12 = vld [vmem:[#allocation15 + $0x20] ss:$8 sps:$4 sm:$0xff]   ;;  %v1980_v13 = vld [vmem:[#allocation14 + $0x34] ss:$8 sps:$4 sm:$0xff]  }
  0xa6   :  { %v2535_v14 = vld [vmem:[#allocation15 + $0x34] ss:$8 sps:$4 sm:$0xff]   ;;  %v1984_v15 = vld [vmem:[#allocation14 + $0x30] ss:$8 sps:$4 sm:$0xff]   ;;  %v1986_v17 = vld [vmem:[#allocation3] sm:$0xff]   ;;  %v181_v19 = vshrl.u32 %v180_v18, 7 }
  0xa7   :  { %v2537_v16 = vld [vmem:[#allocation15 + $0x30] ss:$8 sps:$4 sm:$0xff]   ;;  %vm409_vm1 = vcmask 254976   ;;  %vm411_vm2 = vcmask 517376   ;;  %vm1076_vm3 = vcmask 130048   ;;  %vm2312_vm4 = vmmov 0  }
  0xa8   :  { %242 = vmatpush1.bf16.msra.mxu0 %v1972_v7  ;;  %336 = vmatpush1.bf16.msra.mxu1 %v2526_v8  ;;  %v182_v20 = vsub.s32 0, %v181_v19  ;;  %v178_v21 = vld [vmem:[%s2766_s8] sm:$0x3]  ;;  %v186_v22 = vsub.s32 1, %v181_v19  ;;  %v394_v54 = vld [vmem:[#allocation6] sm:$0x3] }
  0xa9   :  { %243 = vmatprep.subr.bf16.mxu0 %v1974_v9  ;;  %337 = vmatprep.subr.bf16.mxu1 %v2529_v10  ;;  %v400_v55 = vsub.f32 1.0, %v394_v54  ;;  %vm1418_vm5 = vcmask 57344   ;;  %vm1430_vm6 = vcmask 64512   ;;  %vm1674_vm7 = vcmask 1040384   ;;  %s2314_s18 = smov [#allocation18]  }
  0xaa   :  { %v183_v23 = vrot.slane %v178_v21, %v182_v20  ;;  %v187_v24 = vrot.slane %v178_v21, %v186_v22  ;;  %s1771_s19 = sshll.u32 %s2314_s18, 4  ;;  %s1772_s19 = int_to_ptr.vmem [resolvable:$true] %s1771_s19 }
  0xab   :  { %v401_v56 = vmul.f32 0.0, %v400_v55  ;;  %s2261_s4 = scalar_lea.vmem %s1772_s19, 32  ;;  %p2266_p3 = scmp.lt.s32.totalorder %s1772_s19, %s1772_s19 }
  0xac   :  { %244 = vmatpush1.bf16.msra.mxu0 %v1978_v11  ;;  %338 = vmatpush1.bf16.msra.mxu1 %v2531_v12  ;;  %p2262_p2 = scmp.ne.s32.totalorder %s1772_s19, %s2261_s4  ;;  %p2267_p4 = scmp.lt.s32.totalorder %s2261_s4, %s2261_s4 }
  0xad   :  { %245 = vmatprep.subr.bf16.mxu0 %v1980_v13  ;;  %339 = vmatprep.subr.bf16.mxu1 %v2535_v14 }
  0xae   :  { %p2268_p5 = por %p2267_p4, %p2266_p3 }
  0xb0   :  { %246 = vmatpush1.bf16.msra.mxu0 %v1984_v15  ;;  %340 = vmatpush1.bf16.msra.mxu1 %v2537_v16  ;;  %p2269_p6 = pnand %p2268_p5, %p2262_p2 }
  0xb1   :  { %417 = vmatprep.subr.bf16.mxu0 %v2518_v2  ;;  %514 = vmatprep.subr.bf16.mxu1 %v2518_v2 }
  0xb3   :  { %1793 = vmatmul.mubr.msk.bf16.vlgmr.msra.gmra.mrb[0].mxu0 %vm235_vm0, %v1986_v17  ;;  %366 = vmatmul.mubr.bf16.vlgmr.msra.gmra.mrb[0].mxu1 %v2310_v0 }
  0xb4   :  { %418 = vmatpush1.bf16.msra.mxu0 %v2520_v4  ;;  %449 = vmatprep.mubr.bf16.mxu0 %v2310_v0 }
  0xb5   :  { %419 = vmatprep.subr.bf16.mxu0 %v2524_v6  ;;  %515 = vmatpush1.bf16.msra.mxu1 %v2520_v4 }
  0xb6   :  { %516 = vmatprep.subr.bf16.mxu1 %v2524_v6  ;;  %546 = vmatprep.mubr.bf16.mxu1 %v2310_v0 }
  0xb8   :  { %420 = vmatpush1.bf16.msra.mxu0 %v2526_v8 }
  0xb9   :  { %421 = vmatprep.subr.bf16.mxu0 %v2529_v10  ;;  %517 = vmatpush1.bf16.msra.mxu1 %v2526_v8 }
  0xba   :  { %518 = vmatprep.subr.bf16.mxu1 %v2529_v10 }
  0xbc   :  { %422 = vmatpush1.bf16.msra.mxu0 %v2531_v12 }
  0xbd   :  { %423 = vmatprep.subr.bf16.mxu0 %v2535_v14  ;;  %519 = vmatpush1.bf16.msra.mxu1 %v2531_v12 }
  0xbe   :  { %520 = vmatprep.subr.bf16.mxu1 %v2535_v14 }
  0xc0   :  { %424 = vmatpush1.bf16.msra.mxu0 %v2537_v16 }
  0xc1   :  { %521 = vmatpush1.bf16.msra.mxu1 %v2537_v16  ;;  %611 = vmatprep.subr.bf16.mxu0 %v2518_v2 }
  0xc2   :  { %708 = vmatprep.subr.bf16.mxu1 %v2518_v2 }
 0x186   :  { %v273_v25 = vpop.f32.mrb[0].mxu0  ;;  %v367_v26 = vpop.f32.mrb[0].mxu1 }
 0x187   :  { %v2567_v27 = vadd.f32 %v273_v25, %v183_v23  ;;  %v275_v28 = vpop.f32.mrb[1].mxu0  ;;  %v369_v29 = vpop.f32.mrb[1].mxu1 }
 0x188   :  { %v277_v30 = vpop.f32.mrb[2].mxu0  ;;  %v371_v31 = vpop.f32.mrb[2].mxu1  ;;  %v2570_v33 = vadd.f32 %v275_v28, %v187_v24 }
 0x189   :  { %v374_v32 = vadd.f32 %v367_v26, %v2567_v27  ;;  %v2572_v34 = vadd.f32 %v277_v30, %v183_v23  ;;  %v279_v35 = vpop.f32.mrb[3].mxu0  ;;  %v372_v36 = vpop.f32.mrb[3].mxu1 }
 0x18a   :  { %v2574_v37 = vadd.f32 %v279_v35, %v187_v24  ;;  %v375_v39 = vadd.f32 %v369_v29, %v2570_v33 }
 0x18b   :  { %v376_v38 = vmul.f32 0.5, %v374_v32 }
 0x18c   :  { %v381_v45 = vmul.f32 0.5, %v375_v39 }
 0x18d   :  { %1991 = vtanh.f32 %v376_v38 }
 0x18e   :  { %1993 = vtanh.f32 %v375_v39 }
 0x18f   :  { %1995 = vtanh.f32 %v381_v45 }
 0x197   :  { %v1992_v40 = vpop.eup %1991 }
 0x198   :  { %v378_v41 = vadd.f32 1.0, %v1992_v40  ;;  %v1994_v43 = vpop.eup %1993  ;;  %v490_v40 = vld [vmem:[#allocation6 + $0x2] sm:$0x3] }
 0x199   :  { %v1996_v49 = vpop.eup %1995 }
 0x19a   :  { %v379_v42 = vmul.f32 0.5, %v378_v41  ;;  %v383_v50 = vadd.f32 1.0, %v1996_v49  ;;  %v497_v41 = vsub.f32 1.0, %v490_v40 }
 0x19c   :  { %v386_v44 = vmul.f32 %v1994_v43, %v379_v42  ;;  %v385_v46 = vmul.f32 0.0, %v379_v42  ;;  %v384_v51 = vmul.f32 0.5, %v383_v50 }
 0x19e   :  { %388 = vrot.lane.b32.xlu0 %v386_v44, %s2304_s7 }
 0x210   :  { %v389_v47 = vpop.permute.xlu0 %388 }
 0x211   :  { %v391_v48 = vadd.f32 %v389_v47, %v385_v46 }
 0x213   :  { %1997 = vtanh.f32 %v391_v48  ;;  %404 = vrot.lane.b32.xlu1 %v391_v48, %s2304_s7 }
 0x21d   :  { %v1998_v52 = vpop.eup %1997 }
 0x21e   :  { %v393_v53 = vmul.f32 %v1998_v52, %v384_v51 }
 0x220   :  { %396 = vrot.lane.b32.xlu0 %v393_v53, %s2304_s7 }
 0x285   :  { %v405_v57 = vpop.permute.xlu1 %404 }
 0x286   :  { %v407_v58 = vmul.f32 %v405_v57, %v394_v54 }
 0x288   :  { %v408_v59 = vadd.f32 %v407_v58, %v401_v56 }
 0x28a   :  { %v476_v60 = vrot.slane %v408_v59, 6  ;;  %v506_v43 = vmul.f32 %v497_v41, %v408_v59 }
 0x28c   :  { %477 = vrot.lane.b32.xlu1 %v476_v60, %s2304_s7 }
 0x292   :  { %v397_v61 = vpop.permute.xlu0 %396 }
 0x293   :  { %v399_v62 = vmul.f32 %v397_v61, %v394_v54 }
 0x295   :  { %v402_v63 = vadd.f32 %v401_v56, %v399_v62  ;;  %410 = vst.msk [vmem:[#allocation2] sm:$0x3] %vm409_vm1, %v399_v62 }
 0x296   :  { %412 = vst.msk [vmem:[#allocation2 + $0xe] sm:$0x3] %vm411_vm2, %v399_v62 }
 0x297   :  { %v413_v1 = vpack.c.bf16 %v402_v63, %v402_v63  ;;  %v498_v48 = vmul.f32 %v497_v41, %v402_v63 }
 0x299   :  { %1802 = vmatmul.mubr.msk.bf16.vlgmr.msra.gmra.mrb[4].mxu0 %vm235_vm0, %v413_v1 }
 0x29a   :  { %612 = vmatpush1.bf16.msra.mxu0 %v2520_v4  ;;  %643 = vmatprep.mubr.bf16.mxu0 %v2310_v0 }
 0x29b   :  { %613 = vmatprep.subr.bf16.mxu0 %v2524_v6 }
 0x29e   :  { %614 = vmatpush1.bf16.msra.mxu0 %v2526_v8 }
 0x29f   :  { %615 = vmatprep.subr.bf16.mxu0 %v2529_v10 }
 0x2a2   :  { %616 = vmatpush1.bf16.msra.mxu0 %v2531_v12 }
 0x2a3   :  { %617 = vmatprep.subr.bf16.mxu0 %v2535_v14 }
 0x2a6   :  { %618 = vmatpush1.bf16.msra.mxu0 %v2537_v16 }
 0x2a7   :  { %796 = vmatprep.subr.bf16.mxu0 %v2518_v2 }
 0x2fe   :  { %v478_v25 = vpop.permute.xlu1 %477 }
 0x36c   :  { %v451_v3 = vpop.f32.mrb[4].mxu0 }
 0x36d   :  { %v460_v5 = vrot.slane %v451_v3, 6  ;;  %v453_v7 = vpop.f32.mrb[5].mxu0 }
 0x36e   :  { %v455_v9 = vpop.f32.mrb[6].mxu0  ;;  %v461_v13 = vrot.slane %v453_v7, 6 }
 0x36f   :  { %v464_v11 = vadd.f32 %v460_v5, %v2567_v27  ;;  %v456_v15 = vpop.f32.mrb[7].mxu0 }
 0x370   :  { %v465_v18 = vadd.f32 %v461_v13, %v2570_v33 }
 0x371   :  { %v466_v17 = vmul.f32 0.5, %v464_v11 }
 0x372   :  { %v471_v24 = vmul.f32 0.5, %v465_v18 }
 0x373   :  { %1999 = vtanh.f32 %v466_v17 }
 0x374   :  { %2001 = vtanh.f32 %v465_v18 }
 0x375   :  { %2003 = vtanh.f32 %v471_v24 }
 0x37d   :  { %v2000_v19 = vpop.eup %1999 }
 0x37e   :  { %v468_v20 = vadd.f32 1.0, %v2000_v19  ;;  %v2002_v22 = vpop.eup %2001 }
 0x37f   :  { %v2004_v31 = vpop.eup %2003 }
 0x380   :  { %v469_v21 = vmul.f32 0.5, %v468_v20  ;;  %v473_v32 = vadd.f32 1.0, %v2004_v31 }
 0x382   :  { %v481_v23 = vmul.f32 %v2002_v22, %v469_v21  ;;  %v480_v26 = vmul.f32 %v478_v25, %v469_v21  ;;  %v474_v35 = vmul.f32 0.5, %v473_v32 }
 0x384   :  { %483 = vrot.lane.b32.xlu0 %v481_v23, %s2304_s7  ;;  %v587_v23 = vld [vmem:[#allocation6 + $0x4] sm:$0x3] }
 0x385   :  { %v594_v24 = vsub.f32 1.0, %v587_v23 }
 0x3f6   :  { %v484_v28 = vpop.permute.xlu0 %483 }
 0x3f7   :  { %v486_v29 = vadd.f32 %v484_v28, %v480_v26 }
 0x3f9   :  { %2005 = vtanh.f32 %v486_v29  ;;  %v501_v30 = vrot.slane %v486_v29, 2 }
 0x3fb   :  { %502 = vrot.lane.b32.xlu0 %v501_v30, %s2304_s7 }
 0x403   :  { %v2006_v36 = vpop.eup %2005 }
 0x404   :  { %v488_v38 = vmul.f32 %v2006_v36, %v474_v35 }
 0x406   :  { %v492_v39 = vrot.slane %v488_v38, 2 }
 0x408   :  { %493 = vrot.lane.b32.xlu1 %v492_v39, %s2304_s7 }
 0x46d   :  { %v503_v42 = vpop.permute.xlu0 %502 }
 0x46e   :  { %v505_v44 = vmul.f32 %v503_v42, %v490_v40 }
 0x470   :  { %v507_v45 = vadd.f32 %v506_v43, %v505_v44 }
 0x472   :  { %v573_v46 = vrot.slane %v507_v45, 4  ;;  %v603_v26 = vmul.f32 %v594_v24, %v507_v45 }
 0x474   :  { %574 = vrot.lane.b32.xlu1 %v573_v46, %s2304_s7 }
 0x47a   :  { %v494_v47 = vpop.permute.xlu1 %493 }
 0x47b   :  { %v496_v49 = vmul.f32 %v494_v47, %v490_v40 }
 0x47d   :  { %v499_v50 = vadd.f32 %v498_v48, %v496_v49  ;;  %508 = vst.msk [vmem:[#allocation2 + $0x2] sm:$0x3] %vm409_vm1, %v496_v49 }
 0x47e   :  { %509 = vst.msk [vmem:[#allocation2 + $0xc] sm:$0x3] %vm411_vm2, %v496_v49 }
 0x47f   :  { %v510_v51 = vpack.c.bf16 %v499_v50, %v499_v50  ;;  %v595_v32 = vmul.f32 %v594_v24, %v499_v50 }
 0x481   :  { %1803 = vmatmul.mubr.msk.bf16.vlgmr.msra.gmra.mrb[4].mxu1 %vm235_vm0, %v510_v51 }
 0x482   :  { %709 = vmatpush1.bf16.msra.mxu1 %v2520_v4  ;;  %740 = vmatprep.mubr.bf16.mxu1 %v2310_v0 }
 0x483   :  { %710 = vmatprep.subr.bf16.mxu1 %v2524_v6 }
 0x486   :  { %711 = vmatpush1.bf16.msra.mxu1 %v2526_v8 }
 0x487   :  { %712 = vmatprep.subr.bf16.mxu1 %v2529_v10 }
 0x48a   :  { %713 = vmatpush1.bf16.msra.mxu1 %v2531_v12 }
 0x48b   :  { %714 = vmatprep.subr.bf16.mxu1 %v2535_v14 }
 0x48e   :  { %715 = vmatpush1.bf16.msra.mxu1 %v2537_v16 }
 0x48f   :  { %893 = vmatprep.subr.bf16.mxu1 %v2518_v2 }
 0x4e6   :  { %v575_v7 = vpop.permute.xlu1 %574 }
 0x554   :  { %v548_v52 = vpop.f32.mrb[4].mxu1 }
 0x555   :  { %v557_v53 = vrot.slane %v548_v52, 4  ;;  %v550_v54 = vpop.f32.mrb[5].mxu1 }
 0x556   :  { %v552_v55 = vpop.f32.mrb[6].mxu1  ;;  %v558_v57 = vrot.slane %v550_v54, 4 }
 0x557   :  { %v561_v56 = vadd.f32 %v557_v53, %v2567_v27  ;;  %v553_v58 = vpop.f32.mrb[7].mxu1 }
 0x558   :  { %v562_v60 = vadd.f32 %v558_v57, %v2570_v33 }
 0x559   :  { %v563_v59 = vmul.f32 0.5, %v561_v56 }
 0x55a   :  { %v568_v5 = vmul.f32 0.5, %v562_v60 }
 0x55b   :  { %2007 = vtanh.f32 %v563_v59 }
 0x55c   :  { %2009 = vtanh.f32 %v562_v60 }
 0x55d   :  { %2011 = vtanh.f32 %v568_v5 }
 0x565   :  { %v2008_v61 = vpop.eup %2007 }
 0x566   :  { %v565_v62 = vadd.f32 1.0, %v2008_v61  ;;  %v2010_v1 = vpop.eup %2009 }
 0x567   :  { %v2012_v17 = vpop.eup %2011 }
 0x568   :  { %v566_v63 = vmul.f32 0.5, %v565_v62  ;;  %v570_v18 = vadd.f32 1.0, %v2012_v17  ;;  %v684_v62 = vld [vmem:[#allocation6 + $0x6] sm:$0x3] }
 0x56a   :  { %v578_v3 = vmul.f32 %v2010_v1, %v566_v63  ;;  %v577_v9 = vmul.f32 %v575_v7, %v566_v63  ;;  %v571_v19 = vmul.f32 0.5, %v570_v18  ;;  %v691_v63 = vsub.f32 1.0, %v684_v62 }
 0x56c   :  { %580 = vrot.lane.b32.xlu0 %v578_v3, %s2304_s7 }
 0x5de   :  { %v581_v11 = vpop.permute.xlu0 %580 }
 0x5df   :  { %v583_v13 = vadd.f32 %v581_v11, %v577_v9 }
 0x5e1   :  { %2013 = vtanh.f32 %v583_v13  ;;  %v598_v15 = vrot.slane %v583_v13, 4 }
 0x5e3   :  { %599 = vrot.lane.b32.xlu0 %v598_v15, %s2304_s7 }
 0x5eb   :  { %v2014_v20 = vpop.eup %2013 }
 0x5ec   :  { %v585_v21 = vmul.f32 %v2014_v20, %v571_v19 }
 0x5ee   :  { %v589_v22 = vrot.slane %v585_v21, 4 }
 0x5f0   :  { %590 = vrot.lane.b32.xlu1 %v589_v22, %s2304_s7 }
 0x655   :  { %v600_v25 = vpop.permute.xlu0 %599 }
 0x656   :  { %v602_v28 = vmul.f32 %v600_v25, %v587_v23 }
 0x658   :  { %v604_v29 = vadd.f32 %v603_v26, %v602_v28 }
 0x65a   :  { %v670_v30 = vrot.slane %v604_v29, 2  ;;  %v700_v5 = vmul.f32 %v691_v63, %v604_v29 }
 0x65c   :  { %671 = vrot.lane.b32.xlu1 %v670_v30, %s2304_s7 }
 0x662   :  { %v591_v31 = vpop.permute.xlu1 %590 }
 0x663   :  { %v593_v35 = vmul.f32 %v591_v31, %v587_v23 }
 0x665   :  { %v596_v36 = vadd.f32 %v595_v32, %v593_v35  ;;  %605 = vst.msk [vmem:[#allocation2 + $0x4] sm:$0x3] %vm409_vm1, %v593_v35 }
 0x666   :  { %606 = vst.msk [vmem:[#allocation2 + $0xa] sm:$0x3] %vm411_vm2, %v593_v35 }
 0x667   :  { %v607_v38 = vpack.c.bf16 %v596_v36, %v596_v36  ;;  %v692_v11 = vmul.f32 %v691_v63, %v596_v36 }
 0x669   :  { %1804 = vmatmul.mubr.msk.bf16.vlgmr.msra.gmra.mrb[8].mxu0 %vm235_vm0, %v607_v38 }
 0x66a   :  { %797 = vmatpush1.bf16.msra.mxu0 %v2520_v4  ;;  %828 = vmatprep.mubr.bf16.mxu0 %v2310_v0 }
 0x66b   :  { %798 = vmatprep.subr.bf16.mxu0 %v2524_v6 }
 0x66e   :  { %799 = vmatpush1.bf16.msra.mxu0 %v2526_v8 }
 0x66f   :  { %800 = vmatprep.subr.bf16.mxu0 %v2529_v10 }
 0x672   :  { %801 = vmatpush1.bf16.msra.mxu0 %v2531_v12 }
 0x673   :  { %802 = vmatprep.subr.bf16.mxu0 %v2535_v14 }
 0x676   :  { %803 = vmatpush1.bf16.msra.mxu0 %v2537_v16 }
 0x677   :  { %990 = vmatprep.subr.bf16.mxu0 %v2518_v2 }
 0x6ce   :  { %v672_v53 = vpop.permute.xlu1 %671 }
 0x73c   :  { %v645_v39 = vpop.f32.mrb[8].mxu0 }
 0x73d   :  { %v654_v40 = vrot.slane %v645_v39, 2  ;;  %v647_v41 = vpop.f32.mrb[9].mxu0 }
 0x73e   :  { %v649_v42 = vpop.f32.mrb[10].mxu0  ;;  %v655_v44 = vrot.slane %v647_v41, 2 }
 0x73f   :  { %v658_v43 = vadd.f32 %v654_v40, %v2567_v27  ;;  %v650_v45 = vpop.f32.mrb[11].mxu0 }
 0x740   :  { %v659_v47 = vadd.f32 %v655_v44, %v2570_v33  ;;  %v774_v44 = vld [vmem:[#allocation6 + $0x8] sm:$0x3] }
 0x741   :  { %v660_v46 = vmul.f32 0.5, %v658_v43  ;;  %v780_v45 = vsub.f32 1.0, %v774_v44 }
 0x742   :  { %v665_v2 = vmul.f32 0.5, %v659_v47 }
 0x743   :  { %2015 = vtanh.f32 %v660_v46 }
 0x744   :  { %2017 = vtanh.f32 %v659_v47 }
 0x745   :  { %2019 = vtanh.f32 %v665_v2 }
 0x74d   :  { %v2016_v48 = vpop.eup %2015 }
 0x74e   :  { %v662_v49 = vadd.f32 1.0, %v2016_v48  ;;  %v2018_v51 = vpop.eup %2017 }
 0x74f   :  { %v2020_v57 = vpop.eup %2019 }
 0x750   :  { %v663_v50 = vmul.f32 0.5, %v662_v49  ;;  %v667_v33 = vadd.f32 1.0, %v2020_v57 }
 0x752   :  { %v675_v52 = vmul.f32 %v2018_v51, %v663_v50  ;;  %v674_v54 = vmul.f32 %v672_v53, %v663_v50  ;;  %v668_v58 = vmul.f32 0.5, %v667_v33 }
 0x754   :  { %677 = vrot.lane.b32.xlu0 %v675_v52, %s2304_s7 }
 0x7c6   :  { %v678_v55 = vpop.permute.xlu0 %677 }
 0x7c7   :  { %v680_v27 = vadd.f32 %v678_v55, %v674_v54 }
 0x7c9   :  { %2021 = vtanh.f32 %v680_v27  ;;  %v695_v56 = vrot.slane %v680_v27, 6 }
 0x7cb   :  { %696 = vrot.lane.b32.xlu0 %v695_v56, %s2304_s7 }
 0x7d3   :  { %v2022_v59 = vpop.eup %2021 }
 0x7d4   :  { %v682_v60 = vmul.f32 %v2022_v59, %v668_v58 }
 0x7d6   :  { %v686_v61 = vrot.slane %v682_v60, 6 }
 0x7d8   :  { %687 = vrot.lane.b32.xlu1 %v686_v61, %s2304_s7 }
 0x83d   :  { %v697_v1 = vpop.permute.xlu0 %696 }
 0x83e   :  { %v699_v3 = vmul.f32 %v697_v1, %v684_v62 }
 0x840   :  { %v701_v7 = vadd.f32 %v700_v5, %v699_v3 }
 0x842   :  { %761 = vrot.lane.b32.xlu1 %v701_v7, %s2304_s7  ;;  %v788_v47 = vmul.f32 %v780_v45, %v701_v7 }
 0x84a   :  { %v688_v9 = vpop.permute.xlu1 %687 }
 0x84b   :  { %v690_v13 = vmul.f32 %v688_v9, %v684_v62 }
 0x84d   :  { %v693_v15 = vadd.f32 %v692_v11, %v690_v13  ;;  %702 = vst.msk [vmem:[#allocation2 + $0x6] sm:$0x3] %vm409_vm1, %v690_v13 }
 0x84e   :  { %703 = vst.msk [vmem:[#allocation2 + $0x8] sm:$0x3] %vm411_vm2, %v690_v13 }
 0x84f   :  { %v704_v17 = vpack.c.bf16 %v693_v15, %v693_v15  ;;  %v781_v52 = vmul.f32 %v780_v45, %v693_v15  ;;  %v869_v15 = vld [vmem:[#allocation6 + $0xa] sm:$0x3] }
 0x851   :  { %1805 = vmatmul.mubr.msk.bf16.vlgmr.msra.gmra.mrb[8].mxu1 %vm235_vm0, %v704_v17  ;;  %v876_v17 = vsub.f32 1.0, %v869_v15 }
 0x852   :  { %894 = vmatpush1.bf16.msra.mxu1 %v2520_v4  ;;  %925 = vmatprep.mubr.bf16.mxu1 %v2310_v0 }
 0x853   :  { %895 = vmatprep.subr.bf16.mxu1 %v2524_v6 }
 0x856   :  { %896 = vmatpush1.bf16.msra.mxu1 %v2526_v8 }
 0x857   :  { %897 = vmatprep.subr.bf16.mxu1 %v2529_v10 }
 0x85a   :  { %898 = vmatpush1.bf16.msra.mxu1 %v2531_v12 }
 0x85b   :  { %899 = vmatprep.subr.bf16.mxu1 %v2535_v14 }
 0x85e   :  { %900 = vmatpush1.bf16.msra.mxu1 %v2537_v16 }
 0x8b4   :  { %v762_v32 = vpop.permute.xlu1 %761 }
 0x924   :  { %v742_v18 = vpop.f32.mrb[8].mxu1 }
 0x925   :  { %v749_v19 = vadd.f32 %v742_v18, %v2572_v34  ;;  %v744_v20 = vpop.f32.mrb[9].mxu1 }
 0x926   :  { %v746_v21 = vpop.f32.mrb[10].mxu1  ;;  %v750_v24 = vadd.f32 %v744_v20, %v2574_v37 }
 0x927   :  { %v751_v22 = vmul.f32 0.5, %v749_v19  ;;  %v747_v23 = vpop.f32.mrb[11].mxu1 }
 0x928   :  { %v756_v31 = vmul.f32 0.5, %v750_v24 }
 0x929   :  { %2023 = vtanh.f32 %v751_v22 }
 0x92a   :  { %2025 = vtanh.f32 %v750_v24 }
 0x92b   :  { %2027 = vtanh.f32 %v756_v31 }
 0x933   :  { %v2024_v25 = vpop.eup %2023 }
 0x934   :  { %v753_v26 = vadd.f32 1.0, %v2024_v25  ;;  %v2026_v29 = vpop.eup %2025 }
 0x935   :  { %v2028_v39 = vpop.eup %2027 }
 0x936   :  { %v754_v28 = vmul.f32 0.5, %v753_v26  ;;  %v758_v40 = vadd.f32 1.0, %v2028_v39 }
 0x938   :  { %v765_v30 = vmul.f32 %v2026_v29, %v754_v28  ;;  %v764_v35 = vmul.f32 %v762_v32, %v754_v28  ;;  %v759_v41 = vmul.f32 0.5, %v758_v40 }
 0x93a   :  { %767 = vrot.lane.b32.xlu0 %v765_v30, %s2304_s7 }
 0x9ac   :  { %v768_v36 = vpop.permute.xlu0 %767 }
 0x9ad   :  { %v770_v38 = vadd.f32 %v768_v36, %v764_v35 }
 0x9af   :  { %2029 = vtanh.f32 %v770_v38  ;;  %784 = vrot.lane.b32.xlu0 %v770_v38, %s2304_s7 }
 0x9b9   :  { %v2030_v42 = vpop.eup %2029 }
 0x9ba   :  { %v772_v43 = vmul.f32 %v2030_v42, %v759_v41 }
 0x9bc   :  { %776 = vrot.lane.b32.xlu1 %v772_v43, %s2304_s7 }
 0xa21   :  { %v785_v46 = vpop.permute.xlu0 %784 }
 0xa22   :  { %v787_v48 = vmul.f32 %v785_v46, %v774_v44 }
 0xa24   :  { %v789_v49 = vadd.f32 %v788_v47, %v787_v48 }
 0xa26   :  { %v855_v50 = vrot.slane %v789_v49, 6  ;;  %v885_v19 = vmul.f32 %v876_v17, %v789_v49 }
 0xa28   :  { %856 = vrot.lane.b32.xlu1 %v855_v50, %s2304_s7 }
 0xa2e   :  { %v777_v51 = vpop.permute.xlu1 %776 }
 0xa2f   :  { %v779_v2 = vmul.f32 %v777_v51, %v774_v44 }
 0xa31   :  { %v782_v53 = vadd.f32 %v781_v52, %v779_v2  ;;  %790 = vst.msk [vmem:[#allocation2 + $0x8] sm:$0x3] %vm409_vm1, %v779_v2 }
 0xa32   :  { %791 = vst.msk [vmem:[#allocation2 + $0x6] sm:$0x3] %vm411_vm2, %v779_v2 }
 0xa33   :  { %v792_v54 = vpack.c.bf16 %v782_v53, %v782_v53  ;;  %v877_v24 = vmul.f32 %v876_v17, %v782_v53 }
 0xa35   :  { %1806 = vmatmul.mubr.msk.bf16.vlgmr.msra.gmra.mrb[12].mxu0 %vm235_vm0, %v792_v54 }
 0xa36   :  { %991 = vmatpush1.bf16.msra.mxu0 %v2520_v4  ;;  %1022 = vmatprep.mubr.bf16.mxu0 %v2310_v0 }
 0xa37   :  { %992 = vmatprep.subr.bf16.mxu0 %v2524_v6 }
 0xa3a   :  { %993 = vmatpush1.bf16.msra.mxu0 %v2526_v8 }
 0xa3b   :  { %994 = vmatprep.subr.bf16.mxu0 %v2529_v10 }
 0xa3e   :  { %995 = vmatpush1.bf16.msra.mxu0 %v2531_v12 }
 0xa3f   :  { %996 = vmatprep.subr.bf16.mxu0 %v2535_v14 }
 0xa42   :  { %997 = vmatpush1.bf16.msra.mxu0 %v2537_v16 }
 0xa9a   :  { %v857_v60 = vpop.permute.xlu1 %856 }
 0xb08   :  { %v830_v55 = vpop.f32.mrb[12].mxu0 }
 0xb09   :  { %v839_v27 = vrot.slane %v830_v55, 6  ;;  %v832_v56 = vpop.f32.mrb[13].mxu0 }
 0xb0a   :  { %v834_v57 = vpop.f32.mrb[14].mxu0  ;;  %v840_v33 = vrot.slane %v832_v56, 6  ;;  %v966_v56 = vld [vmem:[#allocation6 + $0xc] sm:$0x3] }
 0xb0b   :  { %v843_v4 = vadd.f32 %v839_v27, %v2572_v34  ;;  %v835_v0 = vpop.f32.mrb[15].mxu0  ;;  %v973_v57 = vsub.f32 1.0, %v966_v56 }
 0xb0c   :  { %v844_v6 = vadd.f32 %v840_v33, %v2574_v37 }
 0xb0d   :  { %v845_v58 = vmul.f32 0.5, %v843_v4 }
 0xb0e   :  { %v850_v16 = vmul.f32 0.5, %v844_v6 }
 0xb0f   :  { %2031 = vtanh.f32 %v845_v58 }
 0xb10   :  { %2033 = vtanh.f32 %v844_v6 }
 0xb11   :  { %2035 = vtanh.f32 %v850_v16 }
 0xb19   :  { %v2032_v8 = vpop.eup %2031 }
 0xb1a   :  { %v847_v10 = vadd.f32 1.0, %v2032_v8  ;;  %v2034_v59 = vpop.eup %2033 }
 0xb1b   :  { %v2036_v3 = vpop.eup %2035 }
 0xb1c   :  { %v848_v12 = vmul.f32 0.5, %v847_v10  ;;  %v852_v5 = vadd.f32 1.0, %v2036_v3 }
 0xb1e   :  { %v860_v14 = vmul.f32 %v2034_v59, %v848_v12  ;;  %v859_v61 = vmul.f32 %v857_v60, %v848_v12  ;;  %v853_v7 = vmul.f32 0.5, %v852_v5 }
 0xb20   :  { %862 = vrot.lane.b32.xlu0 %v860_v14, %s2304_s7 }
 0xb92   :  { %v863_v62 = vpop.permute.xlu0 %862 }
 0xb93   :  { %v865_v63 = vadd.f32 %v863_v62, %v859_v61 }
 0xb95   :  { %2037 = vtanh.f32 %v865_v63  ;;  %v880_v1 = vrot.slane %v865_v63, 2 }
 0xb97   :  { %881 = vrot.lane.b32.xlu0 %v880_v1, %s2304_s7 }
 0xb9f   :  { %v2038_v9 = vpop.eup %2037 }
 0xba0   :  { %v867_v11 = vmul.f32 %v2038_v9, %v853_v7 }
 0xba2   :  { %v871_v13 = vrot.slane %v867_v11, 2 }
 0xba4   :  { %872 = vrot.lane.b32.xlu1 %v871_v13, %s2304_s7 }
 0xc09   :  { %v882_v18 = vpop.permute.xlu0 %881 }
 0xc0a   :  { %v884_v20 = vmul.f32 %v882_v18, %v869_v15 }
 0xc0c   :  { %v886_v21 = vadd.f32 %v885_v19, %v884_v20 }
 0xc0e   :  { %v952_v22 = vrot.slane %v886_v21, 4  ;;  %v982_v0 = vmul.f32 %v973_v57, %v886_v21 }
 0xc10   :  { %953 = vrot.lane.b32.xlu1 %v952_v22, %s2304_s7 }
 0xc16   :  { %v873_v23 = vpop.permute.xlu1 %872 }
 0xc17   :  { %v875_v25 = vmul.f32 %v873_v23, %v869_v15 }
 0xc19   :  { %v878_v26 = vadd.f32 %v877_v24, %v875_v25  ;;  %887 = vst.msk [vmem:[#allocation2 + $0xa] sm:$0x3] %vm409_vm1, %v875_v25 }
 0xc1a   :  { %888 = vst.msk [vmem:[#allocation2 + $0x4] sm:$0x3] %vm411_vm2, %v875_v25 }
 0xc1b   :  { %v889_v28 = vpack.c.bf16 %v878_v26, %v878_v26  ;;  %v974_v10 = vmul.f32 %v973_v57, %v878_v26 }
 0xc1d   :  { %1807 = vmatmul.mubr.msk.bf16.vlgmr.msra.gmra.mrb[12].mxu1 %vm235_vm0, %v889_v28  ;;  %v1072_v28 = vld [vmem:[#allocation12] sm:$0xff] }
 0xc82   :  { %v954_v47 = vpop.permute.xlu1 %953 }
 0xcf0   :  { %v927_v29 = vpop.f32.mrb[12].mxu1 }
 0xcf1   :  { %v936_v30 = vrot.slane %v927_v29, 4  ;;  %v929_v31 = vpop.f32.mrb[13].mxu1  ;;  %v1987_v29 = vld [vmem:[%s2767_s9] sm:$0xff]  }
 0xcf2   :  { %v931_v32 = vpop.f32.mrb[14].mxu1  ;;  %v937_v36 = vrot.slane %v929_v31, 4  ;;  %v1988_v31 = vld [vmem:[%s2767_s9 + $0x8] sm:$0xff]  }
 0xcf3   :  { %v940_v35 = vadd.f32 %v936_v30, %v2572_v34  ;;  %v932_v38 = vpop.f32.mrb[15].mxu1  ;;  %v2311_v30 = vmov 0.0   ;;  %v1989_v32 = vld [vmem:[%s2767_s9 + $0x10] sm:$0xff]  }
 0xcf4   :  { %v941_v40 = vadd.f32 %v937_v36, %v2574_v37  ;;  %1864 = vmatprep.subr.bf16.mxu1 %v2311_v30  ;;  %v1063_v36 = vld [vmem:[#allocation6 + $0xe] sm:$0x3]  ;;  %1872 = vmatprep.mubr.msk.bf16.mxu1 %vm2312_vm4, %v2311_v30 }
 0xcf5   :  { %v942_v39 = vmul.f32 0.5, %v940_v35  ;;  %1865 = vmatpush3.bf16.msra.mxu1 %v1987_v29  ;;  %v1990_v35 = vld [vmem:[%s2767_s9 + $0x18] sm:$0xff]  }
 0xcf6   :  { %v947_v46 = vmul.f32 0.5, %v941_v40  ;;  %1866 = vmatprep.subr.bf16.mxu1 %v2311_v30 }
 0xcf7   :  { %2039 = vtanh.f32 %v942_v39 }
 0xcf8   :  { %2041 = vtanh.f32 %v941_v40 }
 0xcf9   :  { %2043 = vtanh.f32 %v947_v46  ;;  %1867 = vmatpush3.bf16.msra.mxu1 %v1988_v31 }
 0xcfa   :  { %1868 = vmatprep.subr.bf16.mxu1 %v2311_v30 }
 0xcfd   :  { %1869 = vmatpush3.bf16.msra.mxu1 %v1989_v32 }
 0xcfe   :  { %1870 = vmatprep.subr.bf16.mxu1 %v2311_v30 }
 0xd01   :  { %v2040_v41 = vpop.eup %2039  ;;  %1871 = vmatpush3.bf16.msra.mxu1 %v1990_v35  ;;  %v1676_v35 = vld [vmem:[#allocation17] sm:$0xff] }
 0xd02   :  { %v944_v42 = vadd.f32 1.0, %v2040_v41  ;;  %v2042_v44 = vpop.eup %2041  ;;  %1893 = vmatprep.subr.mxu1 %v2311_v30 }
 0xd03   :  { %v2044_v52 = vpop.eup %2043 }
 0xd04   :  { %v945_v43 = vmul.f32 0.5, %v944_v42  ;;  %v949_v2 = vadd.f32 1.0, %v2044_v52 }
 0xd06   :  { %v957_v45 = vmul.f32 %v2042_v44, %v945_v43  ;;  %v956_v48 = vmul.f32 %v954_v47, %v945_v43  ;;  %v950_v53 = vmul.f32 0.5, %v949_v2  ;;  %v1073_v43 = vld [vmem:[#allocation12 + $0x8] sm:$0xff]  ;;  %v1159_v44 = vld [vmem:[#allocation8 + $0x8] sm:$0xff] }
 0xd08   :  { %959 = vrot.lane.b32.xlu0 %v957_v45, %s2304_s7  ;;  %v1158_v45 = vld [vmem:[#allocation8] sm:$0xff] }
 0xd7a   :  { %v960_v49 = vpop.permute.xlu0 %959 }
 0xd7b   :  { %v962_v50 = vadd.f32 %v960_v49, %v956_v48 }
 0xd7d   :  { %2045 = vtanh.f32 %v962_v50  ;;  %v977_v51 = vrot.slane %v962_v50, 4 }
 0xd7f   :  { %978 = vrot.lane.b32.xlu0 %v977_v51, %s2304_s7  ;;  %v1239_v51 = vld [vmem:[#allocation11] sm:$0xff] }
 0xd87   :  { %v2046_v54 = vpop.eup %2045 }
 0xd88   :  { %v964_v55 = vmul.f32 %v2046_v54, %v950_v53 }
 0xd8a   :  { %v968_v27 = vrot.slane %v964_v55, 4 }
 0xd8c   :  { %969 = vrot.lane.b32.xlu1 %v968_v27, %s2304_s7  ;;  %v1240_v27 = vld [vmem:[#allocation11 + $0x8] sm:$0xff] }
 0xdf1   :  { %v979_v4 = vpop.permute.xlu0 %978 }
 0xdf2   :  { %v981_v33 = vmul.f32 %v979_v4, %v966_v56 }
 0xdf4   :  { %v983_v58 = vadd.f32 %v982_v0, %v981_v33  ;;  %v1330_v0 = vld [vmem:[#allocation9 + $0x8] sm:$0xff] }
 0xdf6   :  { %v1049_v6 = vrot.slane %v983_v58, 2 }
 0xdf8   :  { %1050 = vrot.lane.b32.xlu1 %v1049_v6, %s2304_s7 }
 0xdfe   :  { %v970_v8 = vpop.permute.xlu1 %969 }
 0xdff   :  { %v972_v12 = vmul.f32 %v970_v8, %v966_v56  ;;  %v1816_v56 = vld [vmem:[%s2768_s10] ss:$0 sm:$0xff]  ;;  %v1329_v8 = vld [vmem:[#allocation9] sm:$0xff] }
 0xe01   :  { %v975_v59 = vadd.f32 %v974_v10, %v972_v12  ;;  %984 = vst.msk [vmem:[#allocation2 + $0xc] sm:$0x3] %vm409_vm1, %v972_v12 }
 0xe02   :  { %985 = vst.msk [vmem:[#allocation2 + $0x2] sm:$0x3] %vm411_vm2, %v972_v12 }
 0xe03   :  { %v986_v14 = vpack.c.bf16 %v975_v59, %v975_v59 }
 0xe05   :  { %1808 = vmatmul.mubr.msk.bf16.vlgmr.msra.gmra.mrb[16].mxu0 %vm235_vm0, %v986_v14 }
 0xe06   :  { %1861 = vmatprep.mubr.msk.f32.mxu0 %vm1076_vm3, %v1072_v28 }
 0xe6a   :  { %v1051_v19 = vpop.permute.xlu1 %1050 }
 0xed8   :  { %v1024_v16 = vpop.f32.mrb[16].mxu0 }
 0xed9   :  { %v1033_v60 = vrot.slane %v1024_v16, 2  ;;  %v1026_v61 = vpop.f32.mrb[17].mxu0 }
 0xeda   :  { %v1028_v62 = vpop.f32.mrb[18].mxu0  ;;  %v1034_v1 = vrot.slane %v1026_v61, 2 }
 0xedb   :  { %v1037_v63 = vadd.f32 %v1033_v60, %v2572_v34  ;;  %v1029_v3 = vpop.f32.mrb[19].mxu0 }
 0xedc   :  { %v1038_v7 = vadd.f32 %v1034_v1, %v2574_v37 }
 0xedd   :  { %v1039_v5 = vmul.f32 0.5, %v1037_v63 }
 0xede   :  { %v1044_v18 = vmul.f32 0.5, %v1038_v7 }
 0xedf   :  { %2047 = vtanh.f32 %v1039_v5 }
 0xee0   :  { %2049 = vtanh.f32 %v1038_v7 }
 0xee1   :  { %2051 = vtanh.f32 %v1044_v18 }
 0xee9   :  { %v2048_v9 = vpop.eup %2047 }
 0xeea   :  { %v1041_v11 = vadd.f32 1.0, %v2048_v9  ;;  %v2050_v15 = vpop.eup %2049 }
 0xeeb   :  { %v2052_v22 = vpop.eup %2051 }
 0xeec   :  { %v1042_v13 = vmul.f32 0.5, %v1041_v11  ;;  %v1046_v23 = vadd.f32 1.0, %v2052_v22 }
 0xeee   :  { %v1054_v17 = vmul.f32 %v2050_v15, %v1042_v13  ;;  %v1053_v20 = vmul.f32 %v1051_v19, %v1042_v13  ;;  %v1047_v24 = vmul.f32 0.5, %v1046_v23 }
 0xef0   :  { %1056 = vrot.lane.b32.xlu0 %v1054_v17, %s2304_s7 }
 0xf62   :  { %v1057_v21 = vpop.permute.xlu0 %1056 }
 0xf63   :  { %v1059_v34 = vadd.f32 %v1057_v21, %v1053_v20 }
 0xf65   :  { %2053 = vtanh.f32 %v1059_v34 }
 0xf6f   :  { %v2054_v25 = vpop.eup %2053 }
 0xf70   :  { %v1061_v37 = vmul.f32 %v2054_v25, %v1047_v24 }
 0xf72   :  { %v1065_v26 = vrot.slane %v1061_v37, 6 }
 0xf74   :  { %1066 = vrot.lane.b32.xlu1 %v1065_v26, %s2304_s7 }
 0xfe6   :  { %v1067_v38 = vpop.permute.xlu1 %1066 }
 0xfe7   :  { %v1069_v39 = vmul.f32 %v1067_v38, %v1063_v36  ;;  %v1677_v36 = vld [vmem:[#allocation17 + $0x8] sm:$0xff]  ;;  %v1678_v38 = vld [vmem:[#allocation17 + $0x10] sm:$0xff] }
 0xfe9   :  { %1070 = vst.msk [vmem:[#allocation2 + $0xe] sm:$0x3] %vm409_vm1, %v1069_v39 }
 0xfea   :  { %1071 = vst.msk [vmem:[#allocation2] sm:$0x3] %vm411_vm2, %v1069_v39  ;;  %v2313_v39 = vmov 0.0|0.0  }
 0xff0   :  { %v1075_v41 = vld [vmem:[#allocation2 + $0x8] sm:$0xff] }
 0xff1   :  { %v1074_v40 = vld [vmem:[#allocation2] sm:$0xff] }
 0xff2   :  { %v1922_v42 = vpack.c.bf16 %v1075_v41, %v1074_v40  ;;  %v1931_v40 = vpack.c.bf16 %v1677_v36, %v1676_v35  ;;  %v1679_v41 = vld [vmem:[#allocation17 + $0x18] sm:$0xff] }
 0xff4   :  { %1923 = vmatprep.subr.bf16.mxu0 %v1922_v42 }
 0xff5   :  { %1925 = vmatpush3.bf16.msra.mxu0 %v1922_v42  ;;  %v1934_v42 = vpack.c.bf16 %v1679_v41, %v1678_v38 }
 0xff8   :  { %1862 = vmatmul.mubr.msk.f32.vlgmr.msra.gmra.mrb[20].mxu0 %vm1076_vm3, %v1073_v43 }
 0xff9   :  { %1880 = vmatprep.mubr.msk.f32.mxu0 %vm1076_vm3, %v1239_v51  ;;  %v1681_v51 = vld [vmem:[#allocation17 + $0x28] sm:$0xff] }
0x10cb   :  { %v2708_v46 = vpop.f32.mrb[20].mxu0 }
0x10cc   :  { %v1161_v47 = vmul.f32 %v2708_v46, %v1159_v44  ;;  %v1149_v48 = vpop.f32.mrb[21].mxu0 }
0x10cd   :  { %v1160_v49 = vmul.f32 %v1158_v45, %v1149_v48 }
0x10cf   :  { %v1162_v50 = vpack.c.bf16 %v1161_v47, %v1160_v49 }
0x10d1   :  { %1873 = vmatmul.mubr.msk.bf16.vlgmr.msra.gmra.mrb[16].mxu1 %vm235_vm0, %v1162_v50  ;;  %v1680_v50 = vld [vmem:[#allocation17 + $0x20] sm:$0xff] }
0x10d2   :  { %1894 = vmatpush3.xpose.msk.msra.mxu1 %vm235_vm0, %v2708_v46  ;;  %1895 = vmatprep.mubr.msk.f32.mxu1 %vm2312_vm4, %v2311_v30 }
0x10d3   :  { %1930 = vmatprep.subr.bf16.mxu1 %v2313_v39 }
0x11a4   :  { %v1232_v52 = vpop.f32.mrb[16].mxu1 }
0x11a5   :  { %v1874_v2 = vpop.f32.mrb[17].mxu1 }
0x11a6   :  { %v1235_v53 = vpop.f32.mrb[18].mxu1  ;;  %v1682_v2 = vld [vmem:[#allocation17 + $0x30] sm:$0xff] }
0x11a7   :  { %v1926_v54 = vpack.c.bf16 %v1235_v53, %v1232_v52  ;;  %v1875_v55 = vpop.f32.mrb[19].mxu1  ;;  %v1937_v52 = vpack.c.bf16 %v1681_v51, %v1680_v50  ;;  %v1683_v53 = vld [vmem:[#allocation17 + $0x38] sm:$0xff] }
0x11a9   :  { %1927 = vmatprep.subr.bf16.mxu0 %v1926_v54 }
0x11aa   :  { %1929 = vmatpush3.bf16.msra.mxu0 %v1926_v54  ;;  %v1940_v54 = vpack.c.bf16 %v1683_v53, %v1682_v2 }
0x11ab   :  { %1883 = vmatprep.subr.mxu0 %v2311_v30 }
0x11ad   :  { %1881 = vmatmul.mubr.msk.f32.vlgmr.msra.gmra.mrb[22].mxu0 %vm1076_vm3, %v1240_v27 }
0x11ae   :  { %1885 = vmatprep.mubr.msk.f32.mxu0 %vm2312_vm4, %v2311_v30 }
0x11b3   :  { %1884 = vmatpush3.xpose.msk.msra.mxu0 %vm235_vm0, %v1149_v48 }
0x11b4   :  { %1888 = vmatprep.subr.mxu0 %v2311_v30 }
0x1280   :  { %v1882_v57 = vpop.f32.mrb[22].mxu0 }
0x1281   :  { %v1326_v4 = vadd.f32 %v1882_v57, %v1816_v56  ;;  %v1320_v33 = vpop.f32.mrb[23].mxu0 }
0x1282   :  { %v1321_v58 = vadd.f32 %v1816_v56, %v1320_v33 }
0x1283   :  { %v1332_v6 = vmax.f32 %v1326_v4, 0.0 }
0x1284   :  { %v1331_v10 = vmax.f32 %v1321_v58, 0.0 }
0x1285   :  { %v1334_v12 = vmul.f32 %v1332_v6, %v1330_v0 }
0x1286   :  { %v1333_v59 = vmul.f32 %v1331_v10, %v1329_v8 }
0x1287   :  { %v1504_v14 = vsel %vm235_vm0, %v1334_v12, 0.0 }
0x1288   :  { %v1505_v16 = vrot.slane %v1504_v14, 4  ;;  %v1335_v60 = vsel %vm235_vm0, %v1333_v59, 0.0 }
0x1289   :  { %v1336_v61 = vrot.slane %v1335_v60, 4 }
0x128a   :  { %v1506_v62 = vadd.f32 %v1505_v16, %v1504_v14 }
0x128b   :  { %v1337_v63 = vadd.f32 %v1336_v61, %v1335_v60 }
0x128c   :  { %v1507_v1 = vrot.slane %v1506_v62, 2 }
0x128d   :  { %v1338_v3 = vrot.slane %v1337_v63, 2 }
0x128e   :  { %v1508_v5 = vadd.f32 %v1507_v1, %v1506_v62 }
0x128f   :  { %v1339_v7 = vadd.f32 %v1338_v3, %v1337_v63 }
0x1290   :  { %v1509_v9 = vrot.slane %v1508_v5, 1 }
0x1291   :  { %v1340_v11 = vrot.slane %v1339_v7, 1 }
0x1292   :  { %v1510_v13 = vadd.f32 %v1509_v9, %v1508_v5 }
0x1293   :  { %v1341_v15 = vadd.f32 %v1340_v11, %v1339_v7 }
0x1294   :  { %1896 = vmatmul.mubr.msk.f32.vlgmr.msra.gmra.mrb[20].mxu1 %vm235_vm0, %v1510_v13 }
0x1295   :  { %1886 = vmatmul.mubr.msk.f32.vlgmr.msra.gmra.mrb[24].mxu0 %vm235_vm0, %v1341_v15  ;;  %1919 = vmatprep.mubr.msk.f32.mxu1 %vm2312_vm4, %v2311_v30 }
0x1296   :  { %1889 = vmatpush3.msra.mxu0 %v1149_v48  ;;  %1890 = vmatprep.mubr.msk.f32.mxu0 %vm2312_vm4, %v2311_v30 }
0x1297   :  { %1898 = vmatprep.subr.mxu0 %v2311_v30  ;;  %1932 = vmatpush3.bf16.msra.mxu1 %v1931_v40 }
0x1298   :  { %1933 = vmatprep.subr.bf16.mxu1 %v2313_v39 }
0x129b   :  { %1935 = vmatpush3.bf16.msra.mxu1 %v1934_v42 }
0x129c   :  { %1936 = vmatprep.subr.bf16.mxu1 %v2313_v39 }
0x129f   :  { %1938 = vmatpush3.bf16.msra.mxu1 %v1937_v52 }
0x12a0   :  { %1939 = vmatprep.subr.bf16.mxu1 %v2313_v39 }
0x12a3   :  { %1941 = vmatpush3.bf16.msra.mxu1 %v1940_v54 }
0x1367   :  { %v1583_v17 = vpop.f32.mrb[20].mxu1 }
0x1368   :  { %v1414_v18 = vpop.f32.mrb[24].mxu0  ;;  %v1897_v19 = vpop.f32.mrb[21].mxu1  ;;  %v1587_v20 = vsel %vm1418_vm5, %v1583_v17, -inf }
0x1369   :  { %v1887_v21 = vpop.f32.mrb[25].mxu0  ;;  %1588 = vmax.xlane.f32.xlu1 %v1587_v20  ;;  %v1419_v34 = vsel %vm1418_vm5, %v1414_v18, -inf }
0x136a   :  { %1420 = vmax.xlane.f32.xlu0 %v1419_v34 }
0x13f6   :  { %v1589_v22 = vpop.xlane.xlu1 %1588 }
0x13f7   :  { %v1590_v23 = vsub.f32 %v1583_v17, %v1589_v22  ;;  %v1421_v24 = vpop.xlane.xlu0 %1420 }
0x13f8   :  { %v1422_v25 = vsub.f32 %v1414_v18, %v1421_v24 }
0x13f9   :  { %v1591_v37 = vmul.f32 1.442695, %v1590_v23 }
0x13fa   :  { %v1423_v26 = vmul.f32 1.442695, %v1422_v25 }
0x13fc   :  { %2055 = vpow2.f32 %v1423_v26 }
0x13fd   :  { %2057 = vpow2.f32 %v1591_v37 }
0x1406   :  { %v2056_v28 = vpop.eup %2055 }
0x1407   :  { %v1425_v29 = vsel %vm1418_vm5, %v2056_v28, 0.0  ;;  %v2058_v31 = vpop.eup %2057 }
0x1408   :  { %1426 = vadd.xlane.f32.xlu0 %v1425_v29  ;;  %v1593_v32 = vsel %vm1418_vm5, %v2058_v31, 0.0 }
0x140c   :  { %1594 = vadd.xlane.f32.xlu0 %v1593_v32 }
0x1495   :  { %v1427_v43 = vpop.xlane.xlu0 %1426 }
0x1496   :  { %2059 = vrcp.f32 %v1427_v43 }
0x1499   :  { %v1595_v44 = vpop.xlane.xlu0 %1594 }
0x149a   :  { %2061 = vrcp.f32 %v1595_v44 }
0x14a0   :  { %v2060_v45 = vpop.eup %2059 }
0x14a1   :  { %v1429_v47 = vmul.f32 %v2060_v45, %v2056_v28 }
0x14a3   :  { %1891 = vmatmul.mubr.msk.f32.vlgmr.msra.gmra.mrb[26].mxu0 %vm1430_vm6, %v1429_v47 }
0x14a4   :  { %v2062_v48 = vpop.eup %2061  ;;  %1899 = vmatpush3.msra.mxu0 %v2708_v46  ;;  %1900 = vmatprep.mubr.msk.f32.mxu0 %vm2312_vm4, %v2311_v30  ;;  %v1825_v30 = vld [vmem:[%s2770_s12] ss:$0 sm:$0xff] }
0x14a5   :  { %v1597_v49 = vmul.f32 %v2062_v48, %v2058_v31 }
0x14a7   :  { %1901 = vmatmul.mubr.msk.f32.vlgmr.msra.gmra.mrb[28].mxu0 %vm1430_vm6, %v1597_v49 }
0x1576   :  { %v1500_v55 = vpop.f32.mrb[26].mxu0 }
0x1577   :  { %v1892_v27 = vpop.f32.mrb[27].mxu0 }
0x157a   :  { %v1667_v56 = vpop.f32.mrb[28].mxu0 }
0x157b   :  { %v1672_v57 = vrot.slane %v1667_v56, 7  ;;  %v1902_v46 = vpop.f32.mrb[29].mxu0 }
0x157d   :  { %v1675_v4 = vsel %vm1674_vm7, %v1500_v55, %v1672_v57 }
0x157e   :  { %1920 = vmatmul.mubr.msk.f32.vlgmr.msra.gmra.mrb[22].mxu1 %vm235_vm0, %v1675_v4 }
0x1651   :  { %v1760_v33 = vpop.f32.mrb[22].mxu1 }
0x1652   :  { %v1761_v0 = vadd.f32 %v1825_v30, %v1760_v33  ;;  %v1921_v58 = vpop.f32.mrb[23].mxu1 }
0x1654   :  { %1764 = vst [vmem:[#allocation18] sm:$0x3] %v1761_v0 }
0x1655   :  { %2272 = shalt.err (!%p2269_p6)
}
0x1656   :  { %s2273_s20 = scalar_lea.hbm %s2771_s13, 32 }
0x1657   :  { %p2274_p7 = scmp.ne.s32.totalorder %s2771_s13, %s2273_s20  ;;  %p2277_p8 = scmp.lt.u32.totalorder %s2273_s20, %s2771_s13 }
0x1659   :  { %p2279_p9 = pnand %p2277_p8, %p2274_p7 }
0x165b   :  { %2282 = shalt.err (!%p2279_p9)
}
0x165c   :  { %1774 = dma.vmem_to_hbm [thread:$0]  %s1772_s19, 32, %s2771_s13, [#allocation5]  }
0x165d   :  { %2293 = dma.done.wait [#allocation5], 32  }
0x165e   :  { %2294 = vsyncadd [#allocation5], 4294967264 }
0x165f   :  { %1778 = vsyncpa [#allocation4], 1 }
0x1660   :  { %1779 = vsyncpa [#allocation7], 1 }
0x1661   :  { %1780 = vsyncpa [#allocation10], 1 }
0x1662   :  { %1781 = vsyncpa [#allocation13], 1 }
0x1663   :  { %1782 = vsyncpa [#allocation16], 1 }
0x1664   :  { %1783 = vsyncpa [#allocation5], 1 }

</bundles_post_ra>
